<compile_context>
chip_gen: v5e
topology: v5e:2x2
jax: 0.10.0
libtpu: 0.0.40
codegen_flags: <defaults>
</compile_context>

<pallas_src>
import jax
import jax.numpy as jnp
from jax import lax
from jax.experimental import pallas as pl
from jax.experimental.pallas import tpu as pltpu


def _head_kernel(xq_ref, xkv_ref, wq_ref, wkv_ref, o_ref):
    # xq_ref  : (1, tq, C)  query-tile slab of x
    # xkv_ref : (1, T,  C)  full-sequence slab of x (for K/V projection)
    # wq_ref  : (C, Hp)     bf16 Wq, 1/sqrt(H) pre-folded, zero-padded to 128 lanes
    # wkv_ref : (C, 2*Hp)   bf16 fused [Wk | Wv], zero-padded head blocks
    # o_ref   : (1, tq, Hp) lane-dense (unmasked) output store
    qi = pl.program_id(1)
    tq = xq_ref.shape[1]
    T = xkv_ref.shape[1]
    Hp = wq_ref.shape[1]

    xq = xq_ref[0].astype(jnp.bfloat16)      # (tq, C)
    xkv = xkv_ref[0].astype(jnp.bfloat16)    # (T,  C)

    # Projections: bf16 operands, fp32 MXU accumulation.
    q = jnp.dot(xq, wq_ref[...], preferred_element_type=jnp.float32)      # (tq, Hp) pre-scaled
    kv = jnp.dot(xkv, wkv_ref[...], preferred_element_type=jnp.float32)   # (T, 2*Hp)
    k = kv[:, :Hp].astype(jnp.bfloat16)      # 128-lane-aligned slices
    v = kv[:, Hp:].astype(jnp.bfloat16)

    # scores = q @ k^T : contract on Hp of both operands (no materialized k.T).
    # Zero-padded head columns contribute 0 to the contraction.
    scores = lax.dot_general(
        q.astype(jnp.bfloat16), k,
        dimension_numbers=(((1,), (1,)), ((), ())),
        preferred_element_type=jnp.float32)                               # (tq, T)

    # Tile-local causal mask using the global query-row offset.  The diagonal
    # is always unmasked, so no all--inf rows -> no NaN from the softmax.
    row = qi * tq + lax.broadcasted_iota(jnp.int32, (tq, T), 0)
    col = lax.broadcasted_iota(jnp.int32, (tq, T), 1)
    scores = jnp.where(col <= row, scores, jnp.float32(-jnp.inf))

    # Numerically stable softmax in fp32; reciprocal on the EUP.
    m = jnp.max(scores, axis=-1, keepdims=True)
    e = jnp.exp(scores - m)
    denom = jnp.sum(e, axis=-1, keepdims=True)
    wei = e * pl.reciprocal(denom, approx=True)                           # (tq, T)

    # Weighted sum of values; padded v columns are zero -> padded out cols zero.
    out = jnp.dot(wei.astype(jnp.bfloat16), v,
                  preferred_element_type=jnp.float32)                     # (tq, Hp)
    o_ref[0] = out.astype(o_ref.dtype)


def _pick_query_tile(T):
    # Largest power-of-two tile (>=8) that yields at least 2 query programs.
    for cand in (128, 64, 32, 16, 8):
        if T % cand == 0 and T // cand >= 2:
            return cand
    return T


def head_forward(x, wk, wq, wv):
    """x: (B, T, C) float32; wk/wq/wv: (C, H) float32 -> (B, T, H)."""
    B, T, C = x.shape
    H = wk.shape[1]
    Hp = ((H + 127) // 128) * 128      # pad head dim up to a full 128-lane vreg width
    scale = jnp.float32(H) ** jnp.float32(-0.5)

    def pad_cols(w):
        return jnp.pad(w, ((0, 0), (0, Hp - H))) if Hp != H else w

    # Fold 1/sqrt(H) into Wq; fuse + pre-cast weights to bf16 in the wrapper so
    # the kernel never re-casts them and the weight DMA bytes are halved.
    w_q = pad_cols(wq * scale).astype(jnp.bfloat16)                                    # (C, Hp)
    w_kv = jnp.concatenate([pad_cols(wk), pad_cols(wv)], axis=1).astype(jnp.bfloat16)  # (C, 2*Hp)

    tq = _pick_query_tile(T)
    n_q = T // tq

    out_padded = pl.pallas_call(
        _head_kernel,
        out_shape=jax.ShapeDtypeStruct((B, T, Hp), x.dtype),
        grid_spec=pltpu.PrefetchScalarGridSpec(
            num_scalar_prefetch=0,
            grid=(B, n_q),
            in_specs=[
                pl.BlockSpec((1, tq, C), lambda b, qi: (b, qi, 0)),   # query tile of x
                pl.BlockSpec((1, T, C), lambda b, qi: (b, 0, 0)),     # full x for K/V
                pl.BlockSpec((C, Hp), lambda b, qi: (0, 0)),          # Wq (scaled, padded)
                pl.BlockSpec((C, 2 * Hp), lambda b, qi: (0, 0)),      # [Wk | Wv]
            ],
            out_specs=pl.BlockSpec((1, tq, Hp), lambda b, qi: (b, qi, 0)),
        ),
        compiler_params=pltpu.CompilerParams(
            dimension_semantics=("parallel", "parallel"),
        ),
    )(x, x, w_q, w_kv)

    # Drop the zero head-padding (wrapper-side layout plumbing only).
    return out_padded[:, :, :H] if Hp != H else out_padded


def reference_head(x, wk, wq, wv):
    """Pure-JAX fp32 reference matching the PyTorch forward (eval mode)."""
    k = x @ wk
    q = x @ wq
    v = x @ wv
    H = k.shape[-1]
    wei = (q @ jnp.swapaxes(k, -2, -1)) * (H ** -0.5)
    T = x.shape[1]
    mask = jnp.tril(jnp.ones((T, T), dtype=bool))
    wei = jnp.where(mask[None, :, :], wei, -jnp.inf)
    wei = jax.nn.softmax(wei, axis=-1)
    return wei @ v


if __name__ == "__main__":
    # Small shapes consistent with the module: n_embed -> C, head_size -> H.
    B, T, C, H = 2, 128, 384, 64  # T <= block_size(256)

    key = jax.random.PRNGKey(0)
    kx, kk, kq, kv = jax.random.split(key, 4)

    x = jax.random.normal(kx, (B, T, C), dtype=jnp.float32)

    # nn.Linear(C, H, bias=False) default init: U(-1/sqrt(C), 1/sqrt(C)),
    # stored here pre-transposed as (C, H).
    bound = 1.0 / (C ** 0.5)
    wk = jax.random.uniform(kk, (C, H), minval=-bound, maxval=bound, dtype=jnp.float32)
    wq = jax.random.uniform(kq, (C, H), minval=-bound, maxval=bound, dtype=jnp.float32)
    wv = jax.random.uniform(kv, (C, H), minval=-bound, maxval=bound, dtype=jnp.float32)

    out = head_forward(x, wk, wq, wv)
    out = jax.block_until_ready(out)

    ref = reference_head(x, wk, wq, wv)
    assert out.shape == (B, T, H)
    # bf16 matmul operands (fp32 accumulate) + approx reciprocal -> relaxed tolerance.
    assert jnp.allclose(out, ref, atol=2e-2, rtol=2e-2), "mismatch vs reference"

    print("KERNEL_OK")
</pallas_src>

<mosaic_0001>
module attributes {stable_mosaic.version = 11 : i64} {
  func.func @_head_kernel(%arg0: i32, %arg1: i32, %arg2: memref<1x64x384xf32, #tpu.memory_space<vmem>>, %arg3: memref<1x128x384xf32, #tpu.memory_space<vmem>>, %arg4: memref<384x128xbf16, #tpu.memory_space<vmem>>, %arg5: memref<384x256xbf16, #tpu.memory_space<vmem>>, %arg6: memref<1x64x128xf32, #tpu.memory_space<vmem>>) attributes {dimension_semantics = [#tpu.dimension_semantics<parallel>, #tpu.dimension_semantics<parallel>], iteration_bounds = array<i64: 2, 2>, scalar_prefetch = 0 : i64, scratch_operands = 0 : i64, tpu.core_type = #tpu.core_type<tc>, window_params = [{transform_indices = @transform_0, window_bounds = array<i64: 1, 64, 384>}, {transform_indices = @transform_1, window_bounds = array<i64: 1, 128, 384>}, {pipeline_mode = #tpu.pipeline_mode<synchronous>, transform_indices = @transform_2, window_bounds = array<i64: 384, 128>}, {pipeline_mode = #tpu.pipeline_mode<synchronous>, transform_indices = @transform_3, window_bounds = array<i64: 384, 256>}, {transform_indices = @transform_4, window_bounds = array<i64: 1, 64, 128>}]} {
    %c0 = arith.constant 0 : index
    %c0_0 = arith.constant 0 : index
    %c0_1 = arith.constant 0 : index
    %0 = vector.load %arg2[%c0, %c0_0, %c0_1] : memref<1x64x384xf32, #tpu.memory_space<vmem>>, vector<1x64x384xf32>
    %1 = vector.shape_cast %0 : vector<1x64x384xf32> to vector<64x384xf32>
    %2 = arith.truncf %1 : vector<64x384xf32> to vector<64x384xbf16>
    %c0_2 = arith.constant 0 : index
    %c0_3 = arith.constant 0 : index
    %c0_4 = arith.constant 0 : index
    %3 = vector.load %arg3[%c0_2, %c0_3, %c0_4] : memref<1x128x384xf32, #tpu.memory_space<vmem>>, vector<1x128x384xf32>
    %4 = vector.shape_cast %3 : vector<1x128x384xf32> to vector<128x384xf32>
    %5 = arith.truncf %4 : vector<128x384xf32> to vector<128x384xbf16>
    %c0_5 = arith.constant 0 : index
    %c0_6 = arith.constant 0 : index
    %6 = vector.load %arg4[%c0_5, %c0_6] : memref<384x128xbf16, #tpu.memory_space<vmem>>, vector<384x128xbf16>
    %cst = arith.constant dense<0.000000e+00> : vector<64x128xf32>
    %7 = tpu.matmul %2, %6, %cst {dimension_numbers = #tpu.dot_dimension_numbers<[1], [0], [0], [1], [0, 0, 1, 1], [], []>} : vector<64x384xbf16>, vector<384x128xbf16>, vector<64x128xf32> -> vector<64x128xf32>
    %c0_7 = arith.constant 0 : index
    %c0_8 = arith.constant 0 : index
    %8 = vector.load %arg5[%c0_7, %c0_8] : memref<384x256xbf16, #tpu.memory_space<vmem>>, vector<384x256xbf16>
    %cst_9 = arith.constant dense<0.000000e+00> : vector<128x256xf32>
    %9 = tpu.matmul %5, %8, %cst_9 {dimension_numbers = #tpu.dot_dimension_numbers<[1], [0], [0], [1], [0, 0, 1, 1], [], []>} : vector<128x384xbf16>, vector<384x256xbf16>, vector<128x256xf32> -> vector<128x256xf32>
    %10 = vector.extract_strided_slice %9 {offsets = [0, 0], sizes = [128, 128], strides = [1, 1]} : vector<128x256xf32> to vector<128x128xf32>
    %11 = arith.truncf %10 : vector<128x128xf32> to vector<128x128xbf16>
    %12 = vector.extract_strided_slice %9 {offsets = [0, 128], sizes = [128, 128], strides = [1, 1]} : vector<128x256xf32> to vector<128x128xf32>
    %13 = arith.truncf %12 : vector<128x128xf32> to vector<128x128xbf16>
    %14 = arith.truncf %7 : vector<64x128xf32> to vector<64x128xbf16>
    %cst_10 = arith.constant dense<0.000000e+00> : vector<64x128xf32>
    %15 = tpu.matmul %14, %11, %cst_10 {dimension_numbers = #tpu.dot_dimension_numbers<[1], [1], [0], [0], [0, 0, 1, 0], [], []>} : vector<64x128xbf16>, vector<128x128xbf16>, vector<64x128xf32> -> vector<64x128xf32>
    %c64_i32 = arith.constant 64 : i32
    %16 = arith.muli %arg1, %c64_i32 : i32
    %17 = tpu.iota {dimensions = array<i32: 0>} : vector<64x128xi32>
    %18 = vector.broadcast %16 : i32 to vector<64x128xi32>
    %19 = arith.addi %18, %17 : vector<64x128xi32>
    %20 = tpu.iota {dimensions = array<i32: 1>} : vector<64x128xi32>
    %21 = arith.cmpi sle, %20, %19 : vector<64x128xi32>
    %cst_11 = arith.constant 0xFF800000 : f32
    %22 = vector.broadcast %cst_11 : f32 to vector<64x128xf32>
    %23 = arith.select %21, %15, %22 : vector<64x128xi1>, vector<64x128xf32>
    %cst_12 = arith.constant dense<0xFF800000> : vector<64xf32>
    %24 = vector.multi_reduction <maximumf>, %23, %cst_12 [1] : vector<64x128xf32> to vector<64xf32>
    %25 = vector.shape_cast %24 : vector<64xf32> to vector<64x1xf32>
    %26 = vector.broadcast %25 : vector<64x1xf32> to vector<64x128xf32>
    %27 = arith.subf %23, %26 : vector<64x128xf32>
    %28 = math.exp %27 : vector<64x128xf32>
    %cst_13 = arith.constant dense<0.000000e+00> : vector<64xf32>
    %29 = vector.multi_reduction <add>, %28, %cst_13 [1] : vector<64x128xf32> to vector<64xf32>
    %30 = vector.shape_cast %29 : vector<64xf32> to vector<64x1xf32>
    %31 = tpu.reciprocal %30 {approx = true} : vector<64x1xf32> -> vector<64x1xf32>
    %32 = vector.broadcast %31 : vector<64x1xf32> to vector<64x128xf32>
    %33 = arith.mulf %28, %32 : vector<64x128xf32>
    %34 = arith.truncf %33 : vector<64x128xf32> to vector<64x128xbf16>
    %cst_14 = arith.constant dense<0.000000e+00> : vector<64x128xf32>
    %35 = tpu.matmul %34, %13, %cst_14 {dimension_numbers = #tpu.dot_dimension_numbers<[1], [0], [0], [1], [0, 0, 1, 1], [], []>} : vector<64x128xbf16>, vector<128x128xbf16>, vector<64x128xf32> -> vector<64x128xf32>
    %c0_15 = arith.constant 0 : index
    %c0_16 = arith.constant 0 : index
    %c0_17 = arith.constant 0 : index
    %36 = vector.load %arg6[%c0_15, %c0_16, %c0_17] : memref<1x64x128xf32, #tpu.memory_space<vmem>>, vector<1x64x128xf32>
    %37 = vector.shape_cast %36 : vector<1x64x128xf32> to vector<64x128xf32>
    %38 = vector.shape_cast %35 : vector<64x128xf32> to vector<1x64x128xf32>
    tpu.vector_store %arg6[%c0_15, %c0_16, %c0_17], %38 {strides = array<i32>} : memref<1x64x128xf32, #tpu.memory_space<vmem>>, vector<1x64x128xf32>,
    return
  }
  func.func @transform_0(%arg0: i32, %arg1: i32) -> (i32, i32, i32) {
    %c0_i32 = arith.constant 0 : i32
    %c0_i32_0 = arith.constant 0 : i32
    return %arg0, %arg1, %c0_i32 : i32, i32, i32
  }
  func.func @transform_1(%arg0: i32, %arg1: i32) -> (i32, i32, i32) {
    %c0_i32 = arith.constant 0 : i32
    %c0_i32_0 = arith.constant 0 : i32
    %c0_i32_1 = arith.constant 0 : i32
    return %arg0, %c0_i32, %c0_i32_0 : i32, i32, i32
  }
  func.func @transform_2(%arg0: i32, %arg1: i32) -> (i32, i32) {
    %c0_i32 = arith.constant 0 : i32
    %c0_i32_0 = arith.constant 0 : i32
    %c0_i32_1 = arith.constant 0 : i32
    return %c0_i32, %c0_i32_0 : i32, i32
  }
  func.func @transform_3(%arg0: i32, %arg1: i32) -> (i32, i32) {
    %c0_i32 = arith.constant 0 : i32
    %c0_i32_0 = arith.constant 0 : i32
    %c0_i32_1 = arith.constant 0 : i32
    return %c0_i32, %c0_i32_0 : i32, i32
  }
  func.func @transform_4(%arg0: i32, %arg1: i32) -> (i32, i32, i32) {
    %c0_i32 = arith.constant 0 : i32
    %c0_i32_0 = arith.constant 0 : i32
    return %arg0, %arg1, %c0_i32 : i32, i32, i32
  }
}

</mosaic_0001>

<bundles_post_ra>
// kernel: tpu_custom_call.1
= control target key start
LH: loop header
LB: loop body
LE: loop exit
PB: predicated region body
PF: predicated region fallthrough
CT: control target
= control target key end

     0   :  { %s3092_s0 = inlined_call_operand.hbm [shape: f32[2,128,384], index: 0, kind: input, shape index: {}]   ;;  %s3093_s1 = inlined_call_operand.hbm [shape: f32[2,128,384], index: 1, kind: input, shape index: {}]   ;;  %s3094_s2 = inlined_call_operand.hbm [shape: bf16[384,128], index: 2, kind: input, shape index: {}]   ;;  %s3095_s3 = inlined_call_operand.hbm [shape: bf16[384,256], index: 3, kind: input, shape index: {}]   ;;  %s3096_s4 = inlined_call_operand.hbm [shape: f32[2,128,128], index: 4, kind: output, shape index: {}]  }
   0x1   :  { %3108 = sst [smem:[#allocation29_spill]] %s3092_s0 }
   0x2   :  { %3109 = sst [smem:[#allocation30_spill]] %s3094_s2 }
   0x3   :  { %3110 = sst [smem:[#allocation31_spill]] %s3095_s3 }
   0x4   :  { %9 = vsyncpa [#allocation3], 0 }
   0x5   :  { %11 = vsyncpa [#allocation3 + $0x1], 0 }
   0x6   :  { %12 = vsyncpa [#allocation6], 0 }
   0x7   :  { %14 = vsyncpa [#allocation6 + $0x1], 0 }
   0x8   :  { %15 = vsyncpa [#allocation9], 0 }
   0x9   :  { %16 = vsyncpa [#allocation4], 0 }
   0xa   :  { %18 = vsyncpa [#allocation4 + $0x1], 0  ;;  %s2487_s15 = smov 0   ;;  %s2489_s16 = smov 0  }
   0xb   :  { %s2491_s17 = smov 0   ;;  %s2493_s18 = smov 0  }
   0xc   :  { %s2495_s19 = smov 0   ;;  %s2497_s20 = smov 0  }
   0xd   :  { %s2499_s21 = smov 0   ;;  %s2501_s22 = smov 0  }
   0xe   :  { %s2503_s23 = smov 0   ;;  %s2505_s24 = smov 0  }
   0xf   :  { %s2507_s25 = smov 0  }
  0x10 LB: > { %3111 = sst [smem:[#allocation16_spill]] %s2422_s18  ;;  %s2541_s26 = sadd.s32 4294967295, %s2450_s25   ;;  %s2450_s25 = sphi %s2507_s25, %s24_s25   ;;  %s2446_s24 = sphi %s2505_s24, %s3158_s24   ;;  %s2442_s23 = sphi %s2503_s23, %s3150_s23   ;;  %s2438_s22 = sphi %s2501_s22, %s3157_s22   ;;  %s2434_s21 = sphi %s2499_s21, %s3149_s21   ;;  %s2430_s20 = sphi %s2497_s20, %s3148_s20   ;;  %s2426_s19 = sphi %s2495_s19, %s3156_s19   ;;  %s2422_s18 = sphi %s2493_s18, %s3155_s18   ;;  %s2418_s17 = sphi %s2491_s17, %s3154_s17   ;;  %s2414_s16 = sphi %s2489_s16, %s3153_s16   ;;  %s2410_s15 = sphi %s2487_s15, %s3152_s15  }
  0x11   : > { %3112 = sst [smem:[#allocation17_spill]] %s2430_s20  ;;  %p84_p0 = scmp.ne.s32.totalorder %s2414_s16, %s2410_s15 }
  0x12   : > { %3113 = sst [smem:[#allocation18_spill]] %s2442_s23  ;;  %p59_p1 = scmp.eq.s32.totalorder %s2541_s26, 0 }
  0x13   : > { %p152_p2 = scmp.eq.s32.totalorder %s2541_s26, 3  ;;  %p1634_p3 = scmp.ge.s32.totalorder %s2450_s25, 1 }
  0x14   : > { %p165_p4 = scmp.lt.s32.totalorder %s2450_s25, 5  ;;  %p2550_p5 = por %p84_p0, %p59_p1 }
  0x15   : > { %s3116_s2 = sld [smem:[#allocation30_spill]]  ;;  %s2452_s6 = smov [#allocation7]  }
  0x16   : > { %p2554_p6 = pnand %p1634_p3, %p165_p4  ;;  %s178_s7 = sshll.u32 %s2452_s6, 4  ;;  %s179_s7 = int_to_ptr.vmem [resolvable:$true] %s178_s7 }
  0x17   : > { %s3117_s3 = sld [smem:[#allocation31_spill]]  ;;  %s2453_s11 = smov 64  }
  0x18   : > { %p2042_p7 = pneg %p2554_p6  ;;  %s2454_s12 = smov 4  }
  0x19   : > { %s2455_s13 = smov [#allocation8]   ;;  %s2456_s15 = smov 128  }
  0x1a   : > { %p2043_p8 = pnand %p2042_p7, %p59_p1  ;;  %s192_s14 = sshll.u32 %s2455_s13, 4  ;;  %s193_s14 = int_to_ptr.vmem [resolvable:$true] %s192_s14 }
  0x1b   : > { %s176_s5 = sshll.u32 %s3116_s2, 4  ;;  %s2457_s29 = smov 8   ;;  %s177_s5 = int_to_ptr.hbm [resolvable:$true] %s176_s5 }
  0x1c   : > { %2045 = dma.hbm_to_vmem [thread:$0]  (!%p2043_p8), %s177_s5, 3072, %s179_s7, [#allocation6], %s2453_s11, %s2453_s11, %s2454_s12  }
  0x1d   : > { %s190_s10 = sshll.u32 %s3117_s3, 4  ;;  %s1633_s30 = sadd.s32 4294967294, %s2450_s25   ;;  %s191_s10 = int_to_ptr.hbm [resolvable:$true] %s190_s10 }
  0x1e   : > { %2048 = dma.hbm_to_vmem [thread:$0]  (!%p2043_p8), %s191_s10, 6144, %s193_s14, [#allocation9], %s2456_s15, %s2456_s15, %s2457_s29  }
  0x1f   : > { %s33_s6 = sadd.s32 1, %s2442_s23  ;;  %s36_s8 = sadd.s32 1, %s2446_s24 }
  0x20   : > { %p34_p9 = scmp.ge.s32.totalorder %s33_s6, 2  ;;  %s45_s9 = sadd.s32 1, %s2430_s20 }
  0x21   : > { %p52_p10 = scmp.ne.s32.totalorder %s2430_s20, %s2426_s19  ;;  %p53_p11 = scmp.eq.s32.totalorder %s2450_s25, 0 }
  0x22   : > { %s3160_s6 = smov (%p34_p9, %s33_s6), 0  ;;  %s3162_s8 = smov (!%p34_p9, %s36_s8), %s2446_s24 }
  0x23   : > { %3118 = sst [smem:[#allocation19_spill]] %s3160_s6  ;;  %s41_s5 = ssub.s32 %s2442_s23, %s3160_s6 }
  0x24   : > { %p2582_p12 = por %p53_p11, %p52_p10  ;;  %p38_p13 = scmp.ge.s32.totalorder %s3162_s8, 2 }
  0x25   : > { %p58_p0 = scmp.ne.s32.totalorder %s2426_s19, %s2422_s18  ;;  %p2590_p3 = por %p152_p2, %p52_p10 }
  0x26   : > { %p158_p4 = scmp.eq.s32.totalorder %s1633_s30, 3  ;;  %s3164_s8 = smov (%p38_p13, %s3162_s8), 0 }
  0x27   : > { %3121 = sst [smem:[#allocation20_spill]] %s3164_s8  ;;  %p2598_p7 = por %p59_p1, %p58_p0 }
  0x28   : > { %p2602_p8 = por %p158_p4, %p58_p0  ;;  %s40_s13 = ssub.s32 %s2446_s24, %s3164_s8 }
  0x29   : > { %p2062_p2 = scmp.lt.s32.totalorder %s2450_s25, 4  ;;  %s42_s14 = sor.u32 %s41_s5, %s40_s13 }
  0x2a   : > { %s3123_s12 = scalar_select %p2602_p8, 1, 0 }
  0x2b   : > { %p69_p9 = scmp.eq.s32.totalorder %s40_s13, 0  ;;  %p43_p10 = scmp.eq.s32.totalorder %s42_s14, 0 }
  0x2c   : > { %3124 = sst [smem:[#allocation21_spill]] %s3123_s12  ;;  %s206_s15 = sand.u32 1, %s2430_s20  }
  0x2d   : > { %s2021_s29 = smul.u32 192, %s206_s15  ;;  %p2050_p13 = pnand %p2062_p2, %p2582_p12 }
  0x2e   : > { %s2611_s30 = scalar_select %p43_p10, %s2430_s20, %s45_s9  }
  0x2f   : > { %s2022_s2 = smul.u32 24, %s2442_s23  ;;  %s210_s6 = scalar_lea.vmem [#allocation2], %s2021_s29 }
  0x30   : > { %3125 = sst [smem:[#allocation22_spill]] %s2611_s30  ;;  %s2023_s3 = smul.u32 48, %s2446_s24 }
  0x31   : > { %s221_s18 = sshll.u32 %s210_s6, 4  ;;  %s3126_s0 = sld [smem:[#allocation29_spill]]  ;;  %s222_s18 = int_to_ptr.vmem [resolvable:$true] %s221_s18 }
  0x32   : > { %s216_s5 = sadd.s32 %s2023_s3, %s2022_s2  ;;  %s207_s20 = scalar_lea.sflag [#allocation3], %s206_s15 }
  0x33   : > { %s1640_s14 = sshll.u32 %s216_s5, 3  ;;  %s2458_s29 = smov 384  }
  0x34   : > { %s2459_s12 = smov 24   ;;  %s71_s6 = sadd.s32 1, %s2418_s17 }
  0x35   : > { %p78_p0 = scmp.ne.s32.totalorder %s2418_s17, %s2414_s16  ;;  %s231_s2 = sand.u32 1, %s2450_s25  }
  0x36   : > { %s2627_s7 = scalar_select %p69_p9, %s2418_s17, %s71_s6  }
  0x37   : > { %s218_s23 = scalar_lea.hbm %s3126_s0, %s1640_s14  ;;  %p80_p12 = por %p78_p0, %p53_p11 }
  0x38   : > { %s219_s30 = sshll.u32 %s218_s23, 4  ;;  %s233_s3 = sand.u32 1, %s2418_s17   ;;  %s220_s30 = int_to_ptr.hbm [resolvable:$true] %s219_s30 }
  0x39   : > { %2052 = dma.hbm_to_vmem [thread:$0]  (!%p2050_p13), %s220_s30, 3072, %s222_s18, %s207_s20, %s2458_s29, %s2458_s29, %s2459_s12  }
  0x3a   : > { %s2024_s5 = smul.u32 384, %s233_s3  ;;  %p2053_p4 = pnand %p2062_p2, %p80_p12 }
  0x3b   : > { %s2025_s8 = smul.u32 384, %s2446_s24  ;;  %s232_s20 = scalar_lea.sflag [#allocation6], %s231_s2 }
  0x3c   : > { %s235_s9 = scalar_lea.vmem [#allocation5], %s2024_s5  ;;  %255 = sbr.rel (%p2554_p6) target bundleno = 1101 (0x44d), region = 36 }
  0x3d   : > { %s240_s15 = scalar_lea.hbm %s3093_s1, %s2025_s8  ;;  %s243_s0 = sshll.u32 %s235_s9, 4  ;;  %s244_s0 = int_to_ptr.vmem [resolvable:$true] %s243_s0 }
  0x3e   : > { %s241_s18 = sshll.u32 %s240_s15, 4  ;;  %s242_s18 = int_to_ptr.hbm [resolvable:$true] %s241_s18 }
  0x3f   : > { %2055 = dma.hbm_to_vmem [thread:$0]  (!%p2053_p4), %s242_s18, 6144, %s244_s0, %s232_s20, %s2458_s29, %s2458_s29, %s2459_s12  }
  0x41   : > { %s2642_s13 = sand.u32 1, %s2426_s19  }
  0x42   : > { %s2026_s30 = smul.u32 192, %s2642_s13  ;;  %s258_s6 = scalar_lea.sflag [#allocation3], %s2642_s13 }
  0x44   : > { %s2646_s3 = scalar_lea.vmem [#allocation2], %s2026_s30 }
  0x45   : > { %2389 = dma.done.wait (%p2598_p7), %s258_s6, 3072  }
  0x46   : > { %2391 = vsyncadd (%p2598_p7), %s258_s6, 4294964224  ;;  %s267_s0 = sand.u32 1, %s2541_s26   ;;  %s269_s28 = sand.u32 1, %s2414_s16  }
  0x47   : > { %s2027_s12 = smul.u32 384, %s269_s28  ;;  %s268_s29 = scalar_lea.sflag [#allocation6], %s267_s0 }
  0x49   : > { %s2654_s2 = scalar_lea.vmem [#allocation5], %s2027_s12 }
  0x4a   : > { %2393 = dma.done.wait (%p2550_p5), %s268_s29, 6144  }
  0x4b   : > { %2395 = vsyncadd (%p2550_p5), %s268_s29, 4294961152 }
  0x4c   : > { %2397 = dma.done.wait (%p59_p1), [#allocation6], 3072  }
  0x4d   : > { %2399 = vsyncadd (%p59_p1), [#allocation6], 4294964224 }
  0x4e   : > { %2401 = dma.done.wait (%p59_p1), [#allocation9], 6144  }
  0x4f   : > { %2403 = vsyncadd (%p59_p1), [#allocation9], 4294961152  ;;  %v1948_v0 = vld [vmem:[#allocation7 + $0x38] sm:$0xff]  ;;  %v1947_v1 = vld [vmem:[#allocation7 + $0x30] sm:$0xff]  ;;  %s1934_s26 = sshll.u32 %s2434_s21, 6  ;;  %s1645_s27 = sshll.u32 %s2642_s13, 6 }
  0x50   : > { %2013 = vmatpush.bf16.msra.mxu1 %v1948_v0  ;;  %v1964_v2 = vld [vmem:[#allocation7 + $0xb8] sm:$0xff]  ;;  %614 = vmatpush.bf16.msra.mxu0 %v1948_v0  ;;  %v1963_v3 = vld [vmem:[#allocation7 + $0xb0] sm:$0xff]  ;;  %v1946_v4 = vld [vmem:[#allocation7 + $0x28] sm:$0xff]  ;;  %s311_s11 = scalar_lea.vmem [#allocation10], %s1645_s27  ;;  %s1936_s5 = sshll.u32 %s2434_s21, 3 }
  0x51   : > { %672 = vmatpush.bf16.msra.mxu2 %v1964_v2  ;;  %v1962_v5 = vld [vmem:[#allocation7 + $0xa8] sm:$0xff]  ;;  %v1945_v6 = vld [vmem:[#allocation7 + $0x20] sm:$0xff]  ;;  %v1944_v8 = vld [vmem:[#allocation7 + $0x18] sm:$0xff]  ;;  %s1937_s8 = sshll.u32 %s2438_s22, 4  ;;  %s1497_s20 = sshll.u32 %s311_s11, 4  ;;  %s1498_s20 = int_to_ptr.vmem [resolvable:$true] %s1497_s20 }
  0x52   : > { %v1961_v7 = vld [vmem:[#allocation7 + $0xa0] sm:$0xff]  ;;  %v1960_v9 = vld [vmem:[#allocation7 + $0x98] sm:$0xff]  ;;  %v1943_v10 = vld [vmem:[#allocation7 + $0x10] sm:$0xff]  ;;  %s1494_s14 = sadd.s32 %s1937_s8, %s1936_s5  ;;  %s1483_s6 = scalar_lea.sflag [#allocation4], %s2642_s13 }
  0x53   : > { %v1959_v11 = vld [vmem:[#allocation7 + $0x90] sm:$0xff]  ;;  %v1942_v12 = vld [vmem:[#allocation7 + $0x8] sm:$0xff]  ;;  %v1941_v14 = vld [vmem:[#allocation7] sm:$0xff]  ;;  %s1938_s23 = sshll.u32 %s1494_s14, 3  ;;  %s2336_s28 = scalar_lea.hbm %s3096_s4, 256 }
  0x54   : > { %2014 = vmatpush.bf16.msra.mxu1 %v1947_v1  ;;  %615 = vmatpush.bf16.msra.mxu0 %v1947_v1  ;;  %v1958_v13 = vld [vmem:[#allocation7 + $0x88] sm:$0xff]  ;;  %v326_v15 = vld [vmem:[%s2646_s3 + $0x60] sm:$0xff]  ;;  %v329_v16 = vld [vmem:[%s2646_s3 + $0x78] sm:$0xff]  ;;  %s1496_s18 = scalar_lea.hbm %s3096_s4, %s1938_s23 }
  0x55   : > { %673 = vmatpush.bf16.msra.mxu2 %v1963_v3  ;;  %v1956_v17 = vld [vmem:[#allocation7 + $0x78] sm:$0xff]  ;;  %v314_v18 = vld [vmem:[%s2646_s3] sm:$0xff]  ;;  %v316_v21 = vld [vmem:[%s2646_s3 + $0x10] sm:$0xff]  ;;  %v344_v23 = vpack.c.bf16 %v329_v16, %v326_v15  ;;  %s1499_s30 = sshll.u32 %s1496_s18, 4  ;;  %s1500_s30 = int_to_ptr.hbm [resolvable:$true] %s1499_s30 }
  0x56   : > { %v317_v19 = vld [vmem:[%s2646_s3 + $0x18] sm:$0xff]  ;;  %v1957_v20 = vld [vmem:[#allocation7 + $0x80] sm:$0xff]  ;;  %v319_v22 = vld [vmem:[%s2646_s3 + $0x28] sm:$0xff]  ;;  %s2330_s21 = sshra.s32 %s1500_s30, 4  ;;  %s2331_s21 = int_to_ptr.hbm [resolvable:$true] %s2330_s21 }
  0x57   : > { %v338_v24 = vpack.c.bf16 %v317_v19, %v314_v18  ;;  %v1955_v25 = vld [vmem:[#allocation7 + $0x70] sm:$0xff]  ;;  %v340_v26 = vpack.c.bf16 %v319_v22, %v316_v21  ;;  %v1954_v27 = vld [vmem:[#allocation7 + $0x68] sm:$0xff]  ;;  %v1953_v28 = vld [vmem:[#allocation7 + $0x60] sm:$0xff]  ;;  %s2332_s22 = scalar_lea.hbm %s2331_s21, 64  ;;  %p2337_p11 = scmp.lt.s32.totalorder %s2331_s21, %s3096_s4 }
  0x58   : > { %2015 = vmatpush.bf16.msra.mxu1 %v1946_v4  ;;  %616 = vmatpush.bf16.msra.mxu0 %v1946_v4  ;;  %v332_v29 = vld [vmem:[%s2646_s3 + $0x90] sm:$0xff]  ;;  %v335_v30 = vld [vmem:[%s2646_s3 + $0xa8] sm:$0xff]  ;;  %v1952_v33 = vld [vmem:[#allocation7 + $0x58] sm:$0xff]  ;;  %p2333_p1 = scmp.ne.s32.totalorder %s2331_s21, %s2332_s22  ;;  %p2338_p7 = scmp.lt.s32.totalorder %s2336_s28, %s2332_s22 }
  0x59   : > { %674 = vmatpush.bf16.msra.mxu2 %v1962_v5  ;;  %v320_v31 = vld [vmem:[%s2646_s3 + $0x30] sm:$0xff]  ;;  %v323_v32 = vld [vmem:[%s2646_s3 + $0x48] sm:$0xff]  ;;  %v322_v34 = vld [vmem:[%s2646_s3 + $0x40] sm:$0xff]  ;;  %v347_v36 = vpack.c.bf16 %v335_v30, %v332_v29 }
  0x5a   : > { %v325_v35 = vld [vmem:[%s2646_s3 + $0x58] sm:$0xff]  ;;  %v341_v37 = vpack.c.bf16 %v323_v32, %v320_v31  ;;  %v1951_v38 = vld [vmem:[#allocation7 + $0x50] sm:$0xff]  ;;  %v1792_v43 = vld [vmem:[#allocation8 + $0x60] sm:$0xf]  ;;  %p2334_p5 = pnand %p2333_p1, %p2590_p3  ;;  %p2339_p2 = por %p2338_p7, %p2337_p11 }
  0x5b   : > { %v343_v39 = vpack.c.bf16 %v325_v35, %v322_v34  ;;  %v1800_v40 = vld [vmem:[#allocation8 + $0x70] sm:$0xf]  ;;  %v1980_v41 = vld [vmem:[#allocation8 + $0x74] sm:$0xf0]  ;;  %v1978_v44 = vld [vmem:[#allocation8 + $0x64] sm:$0xf0] }
  0x5c   : > { %2016 = vmatpush.bf16.msra.mxu1 %v1945_v6  ;;  %617 = vmatpush.bf16.msra.mxu0 %v1945_v6  ;;  %v1801_v42 = vor.u32 %v1980_v41, %v1800_v40  ;;  %v1864_v45 = vld [vmem:[#allocation8 + $0xf0] sm:$0xf]  ;;  %v1950_v46 = vld [vmem:[#allocation7 + $0x48] sm:$0xff]  ;;  %v1793_v47 = vor.u32 %v1978_v44, %v1792_v43  ;;  %v1996_v48 = vld [vmem:[#allocation8 + $0xf4] sm:$0xf0]  ;;  %p2335_p6 = pneg %p2334_p5 }
  0x5d   : > { %675 = vmatpush.bf16.msra.mxu2 %v1961_v7  ;;  %v1784_v49 = vld [vmem:[#allocation8 + $0x50] sm:$0xf]  ;;  %v1865_v50 = vor.u32 %v1996_v48, %v1864_v45  ;;  %v1976_v51 = vld [vmem:[#allocation8 + $0x54] sm:$0xf0]  ;;  %v1856_v52 = vld [vmem:[#allocation8 + $0xe0] sm:$0xf] }
  0x5e   : > { %989 = vmatpush.bf16.msra.mxu3 %v1801_v42  ;;  %v1994_v53 = vld [vmem:[#allocation8 + $0xe4] sm:$0xf0]  ;;  %v1785_v55 = vor.u32 %v1976_v51, %v1784_v49  ;;  %v1848_v56 = vld [vmem:[#allocation8 + $0xd0] sm:$0xf]  ;;  %v1992_v57 = vld [vmem:[#allocation8 + $0xd4] sm:$0xf0]  ;;  %p2340_p9 = pnand %p2339_p2, %p2335_p6 }
  0x5f   : > { %v1857_v54 = vor.u32 %v1994_v53, %v1856_v52  ;;  %v1949_v58 = vld [vmem:[#allocation7 + $0x40] sm:$0xff]  ;;  %v1974_v60 = vld [vmem:[#allocation8 + $0x44] sm:$0xf0]  ;;  %v1849_v61 = vor.u32 %v1992_v57, %v1848_v56  ;;  %v328_v1 = vld [vmem:[%s2646_s3 + $0x70] sm:$0xff] }
  0x60   : > { %2017 = vmatpush.bf16.msra.mxu1 %v1944_v8  ;;  %618 = vmatpush.bf16.msra.mxu0 %v1944_v8  ;;  %v1776_v59 = vld [vmem:[#allocation8 + $0x40] sm:$0xf]  ;;  %v315_v62 = vld [vmem:[%s2646_s3 + $0x8] sm:$0xff]  ;;  %v1768_v5 = vld [vmem:[#allocation8 + $0x30] sm:$0xf] }
  0x61   : > { %676 = vmatpush.bf16.msra.mxu2 %v1960_v9  ;;  %v318_v63 = vld [vmem:[%s2646_s3 + $0x20] sm:$0xff]  ;;  %v1777_v0 = vor.u32 %v1974_v60, %v1776_v59  ;;  %v331_v2 = vld [vmem:[%s2646_s3 + $0x88] sm:$0xff]  ;;  %v1972_v6 = vld [vmem:[#allocation8 + $0x34] sm:$0xf0] }
  0x62   : > { %990 = vmatpush.bf16.msra.mxu3 %v1793_v47  ;;  %v339_v3 = vpack.c.bf16 %v318_v63, %v315_v62  ;;  %v346_v4 = vpack.c.bf16 %v331_v2, %v328_v1  ;;  %v1928_v7 = vld [vmem:[#allocation8 + $0x170] sm:$0xf]  ;;  %v1769_v8 = vor.u32 %v1972_v6, %v1768_v5  ;;  %v2012_v9 = vld [vmem:[#allocation8 + $0x174] sm:$0xf0]  ;;  %v1970_v15 = vld [vmem:[#allocation8 + $0x24] sm:$0xf0] }
  0x63   : > { %v1920_v16 = vld [vmem:[#allocation8 + $0x160] sm:$0xf]  ;;  %v1988_v21 = vld [vmem:[#allocation8 + $0xb4] sm:$0xf0]  ;;  %v1752_v22 = vld [vmem:[#allocation8 + $0x10] sm:$0xf] }
  0x64   : > { %2018 = vmatpush.bf16.msra.mxu1 %v1943_v10  ;;  %619 = vmatpush.bf16.msra.mxu0 %v1943_v10  ;;  %v1929_v10 = vor.u32 %v2012_v9, %v1928_v7  ;;  %v1744_v31 = vld [vmem:[#allocation8] sm:$0xf]  ;;  %v1966_v32 = vld [vmem:[#allocation8 + $0x4] sm:$0xf0]  ;;  %v337_v43 = vld [vmem:[%s2646_s3 + $0xb8] sm:$0xff] }
  0x65   : > { %677 = vmatpush.bf16.msra.mxu2 %v1959_v11  ;;  %v1840_v11 = vld [vmem:[#allocation8 + $0xc0] sm:$0xf]  ;;  %v2006_v35 = vld [vmem:[#allocation8 + $0x144] sm:$0xf0]  ;;  %v1745_v40 = vor.u32 %v1966_v32, %v1744_v31  ;;  %v353_v47 = vld [vmem:[%s2654_s2 + $0x18] sm:$0xff] }
  0x66   : > { %991 = vmatpush.bf16.msra.mxu3 %v1785_v55  ;;  %v1904_v34 = vld [vmem:[#allocation8 + $0x140] sm:$0xf]  ;;  %v2004_v51 = vld [vmem:[#allocation8 + $0x134] sm:$0xf0]  ;;  %v2002_v57 = vld [vmem:[#allocation8 + $0x124] sm:$0xf0] }
  0x67   : > { %v1905_v41 = vor.u32 %v2006_v35, %v1904_v34  ;;  %v334_v42 = vld [vmem:[%s2646_s3 + $0xa0] sm:$0xff]  ;;  %v1880_v62 = vld [vmem:[#allocation8 + $0x110] sm:$0xf]  ;;  %v2000_v63 = vld [vmem:[#allocation8 + $0x114] sm:$0xf0] }
  0x68   : > { %2019 = vmatpush.bf16.msra.mxu1 %v1942_v12  ;;  %620 = vmatpush.bf16.msra.mxu0 %v1942_v12  ;;  %v1990_v12 = vld [vmem:[#allocation8 + $0xc4] sm:$0xf0]  ;;  %v349_v48 = vpack.c.bf16 %v337_v43, %v334_v42  ;;  %v1808_v53 = vld [vmem:[#allocation8 + $0x80] sm:$0xf]  ;;  %v356_v5 = vld [vmem:[%s2654_s2 + $0x30] sm:$0xff] }
  0x69   : > { %678 = vmatpush.bf16.msra.mxu2 %v1958_v13  ;;  %v1760_v13 = vld [vmem:[#allocation8 + $0x20] sm:$0xf]  ;;  %v1998_v2 = vld [vmem:[#allocation8 + $0x104] sm:$0xf0]  ;;  %v361_v32 = vld [vmem:[%s2654_s2 + $0x58] sm:$0xff] }
  0x6a   : > { %992 = vmatpush.bf16.msra.mxu3 %v1777_v0  ;;  %v1761_v18 = vor.u32 %v1970_v15, %v1760_v13  ;;  %v1888_v55 = vld [vmem:[#allocation8 + $0x120] sm:$0xf]  ;;  %v1881_v0 = vor.u32 %v2000_v63, %v1880_v62  ;;  %v359_v6 = vld [vmem:[%s2654_s2 + $0x48] sm:$0xff]  ;;  %v333_v13 = vld [vmem:[%s2646_s3 + $0x98] sm:$0xff] }
  0x6b   : > { %v354_v59 = vld [vmem:[%s2654_s2 + $0x20] sm:$0xff]  ;;  %v1889_v60 = vor.u32 %v2002_v57, %v1888_v55  ;;  %v2702_v9 = vpack.c.bf16 %v359_v6, %v356_v5  ;;  %v377_v35 = vld [vmem:[%s2654_s2 + $0xd8] sm:$0xff]  ;;  %v387_v62 = vld [vmem:[%s2654_s2 + $0x128] sm:$0xff] }
  0x6c   : > { %2020 = vmatpush.bf16.msra.mxu1 %v1941_v14  ;;  %621 = vmatpush.bf16.msra.mxu0 %v1941_v14  ;;  %v1841_v14 = vor.u32 %v1990_v12, %v1840_v11  ;;  %v1872_v1 = vld [vmem:[#allocation8 + $0x100] sm:$0xf]  ;;  %v360_v11 = vld [vmem:[%s2654_s2 + $0x50] sm:$0xff]  ;;  %v379_v5 = vld [vmem:[%s2654_s2 + $0xe8] sm:$0xff] }
  0x6d   : > { %679 = vmatpush.bf16.msra.mxu2 %v1957_v20  ;;  %v1832_v20 = vld [vmem:[#allocation8 + $0xb0] sm:$0xf]  ;;  %v1873_v7 = vor.u32 %v1998_v2, %v1872_v1  ;;  %v362_v15 = vld [vmem:[%s2654_s2 + $0x60] sm:$0xff] }
  0x6e   : > { %993 = vmatpush.bf16.msra.mxu3 %v1769_v8  ;;  %v358_v31 = vld [vmem:[%s2654_s2 + $0x40] sm:$0xff] }
  0x6f   : > { %632 = vmatmul.bf16.vlgmr.msra.gmra.mxu1 %v344_v23  ;;  %622 = vmatmul.bf16.vlgmr.msra.gmra.mxu0 %v338_v24  ;;  %v1833_v23 = vor.u32 %v1988_v21, %v1832_v20  ;;  %v1968_v24 = vld [vmem:[#allocation8 + $0x14] sm:$0xf0]  ;;  %v366_v20 = vld [vmem:[%s2654_s2 + $0x80] sm:$0xff] }
  0x70   : > { %643 = vmatpush.bf16.msrb.mxu1 %v1956_v17  ;;  %680 = vmatmul.bf16.vlgmr.msra.gmra.mxu2 %v340_v26  ;;  %v2010_v17 = vld [vmem:[#allocation8 + $0x164] sm:$0xf0]  ;;  %v2008_v26 = vld [vmem:[#allocation8 + $0x154] sm:$0xf0]  ;;  %v1753_v29 = vor.u32 %v1968_v24, %v1752_v22  ;;  %v352_v22 = vld [vmem:[%s2654_s2 + $0x10] sm:$0xff] }
  0x71   : > { %1038 = vmatpush.bf16.msrb.mxu0 %v1865_v50  ;;  %v1921_v19 = vor.u32 %v2010_v17, %v1920_v16  ;;  %v1896_v50 = vld [vmem:[#allocation8 + $0x130] sm:$0xf]  ;;  %v365_v16 = vld [vmem:[%s2654_s2 + $0x78] sm:$0xff]  ;;  %v374_v34 = vld [vmem:[%s2654_s2 + $0xc0] sm:$0xff] }
  0x72   : > { %994 = vmatpush.bf16.msra.mxu3 %v1761_v18  ;;  %v1897_v52 = vor.u32 %v2004_v51, %v1896_v50  ;;  %v2714_v18 = vpack.c.bf16 %v365_v16, %v362_v15  ;;  %v386_v57 = vld [vmem:[%s2654_s2 + $0x120] sm:$0xff]  ;;  %v393_v16 = vld [vmem:[%s2654_s2 + $0x158] sm:$0xff] }
  0x73   : > { %v390_v63 = vld [vmem:[%s2654_s2 + $0x140] sm:$0xff] }
  0x74   : > { %644 = vmatpush.bf16.msrb.mxu1 %v1955_v25  ;;  %v1912_v25 = vld [vmem:[#allocation8 + $0x150] sm:$0xf] }
  0x75   : > { %1039 = vmatpush.bf16.msrb.mxu0 %v1857_v54  ;;  %v1913_v30 = vor.u32 %v2008_v26, %v1912_v25  ;;  %v1982_v54 = vld [vmem:[#allocation8 + $0x84] sm:$0xf0]  ;;  %v368_v25 = vld [vmem:[%s2654_s2 + $0x90] sm:$0xff] }
  0x76   : > { %995 = vmatpush.bf16.msra.mxu3 %v1753_v29  ;;  %v1809_v56 = vor.u32 %v1982_v54, %v1808_v53  ;;  %v371_v26 = vld [vmem:[%s2654_s2 + $0xa8] sm:$0xff]  ;;  %v372_v29 = vld [vmem:[%s2654_s2 + $0xb0] sm:$0xff]  ;;  %v373_v53 = vld [vmem:[%s2654_s2 + $0xb8] sm:$0xff] }
  0x78   : > { %645 = vmatpush.bf16.msrb.mxu1 %v1954_v27  ;;  %v1824_v27 = vld [vmem:[#allocation8 + $0xa0] sm:$0xf] }
  0x79   : > { %1040 = vmatpush.bf16.msrb.mxu0 %v1849_v61 }
  0x7a   : > { %996 = vmatpush.bf16.msra.mxu3 %v1745_v40  ;;  %v364_v40 = vld [vmem:[%s2654_s2 + $0x70] sm:$0xff] }
  0x7c   : > { %646 = vmatpush.bf16.msrb.mxu1 %v1953_v28  ;;  %v1986_v28 = vld [vmem:[#allocation8 + $0xa4] sm:$0xf0] }
  0x7d   : > { %1041 = vmatpush.bf16.msrb.mxu0 %v1841_v14  ;;  %v336_v14 = vld [vmem:[%s2646_s3 + $0xb0] sm:$0xff] }
  0x7e   : > { %v348_v17 = vpack.c.bf16 %v336_v14, %v333_v13 }
  0x7f   : > { %637 = vmatmul.bf16.gmra.mxu1 %v347_v36  ;;  %627 = vmatmul.bf16.gmra.mxu0 %v341_v37  ;;  %v1816_v36 = vld [vmem:[#allocation8 + $0x90] sm:$0xf]  ;;  %v1984_v37 = vld [vmem:[#allocation8 + $0x94] sm:$0xf0] }
  0x80   : > { %647 = vmatpush.bf16.msrb.mxu1 %v1952_v33  ;;  %685 = vmatmul.bf16.gmra.mxu2 %v343_v39  ;;  %v1825_v33 = vor.u32 %v1986_v28, %v1824_v27  ;;  %v324_v39 = vld [vmem:[%s2646_s3 + $0x50] sm:$0xff]  ;;  %v1817_v44 = vor.u32 %v1984_v37, %v1816_v36  ;;  %v2728_v27 = vpack.c.bf16 %v371_v26, %v368_v25  ;;  %v369_v28 = vld [vmem:[%s2654_s2 + $0x98] sm:$0xff]  ;;  %v375_v37 = vld [vmem:[%s2654_s2 + $0xc8] sm:$0xff] }
  0x81   : > { %1042 = vmatpush.bf16.msrb.mxu0 %v1833_v23  ;;  %v355_v23 = vld [vmem:[%s2654_s2 + $0x28] sm:$0xff]  ;;  %v2743_v36 = vpack.c.bf16 %v377_v35, %v374_v34 }
  0x82   : > { %v2724_v24 = vpack.c.bf16 %v355_v23, %v352_v22  ;;  %v382_v22 = vld [vmem:[%s2654_s2 + $0x100] sm:$0xff]  ;;  %v385_v23 = vld [vmem:[%s2654_s2 + $0x118] sm:$0xff] }
  0x83   : > { %v2821_v26 = vpack.c.bf16 %v385_v23, %v382_v22 }
  0x84   : > { %648 = vmatpush.bf16.msrb.mxu1 %v1951_v38  ;;  %v321_v38 = vld [vmem:[%s2646_s3 + $0x38] sm:$0xff] }
  0x85   : > { %1043 = vmatpush.bf16.msrb.mxu0 %v1825_v33  ;;  %v342_v45 = vpack.c.bf16 %v324_v39, %v321_v38  ;;  %v2739_v33 = vpack.c.bf16 %v361_v32, %v358_v31  ;;  %v378_v38 = vld [vmem:[%s2654_s2 + $0xe0] sm:$0xff] }
  0x86   : > { %v2749_v39 = vpack.c.bf16 %v378_v38, %v375_v37 }
  0x88   : > { %649 = vmatpush.bf16.msrb.mxu1 %v1950_v46  ;;  %v350_v46 = vld [vmem:[%s2654_s2] sm:$0xff] }
  0x89   : > { %v2690_v49 = vpack.c.bf16 %v353_v47, %v350_v46  ;;  %1044 = vmatpush.bf16.msrb.mxu0 %v1817_v44  ;;  %v380_v44 = vld [vmem:[%s2654_s2 + $0xf0] sm:$0xff]  ;;  %v381_v47 = vld [vmem:[%s2654_s2 + $0xf8] sm:$0xff] }
  0x8b   : > { %997 = vmatmul.bf16.vlgmr.msra.gmra.mxu3 %v2690_v49 }
  0x8c   : > { %650 = vmatpush.bf16.msrb.mxu1 %v1949_v58  ;;  %v351_v58 = vld [vmem:[%s2654_s2 + $0x8] sm:$0xff] }
  0x8d   : > { %v2695_v61 = vpack.c.bf16 %v354_v59, %v351_v58  ;;  %1045 = vmatpush.bf16.msrb.mxu0 %v1809_v56  ;;  %v389_v58 = vld [vmem:[%s2654_s2 + $0x138] sm:$0xff] }
  0x8f   : > { %651 = vmatmul.bf16.vlgmr.msrb.gmra.mxu1 %v339_v3  ;;  %v327_v3 = vld [vmem:[%s2646_s3 + $0x68] sm:$0xff] }
  0x90   : > { %690 = vmatmul.bf16.gmra.mxu2 %v346_v4  ;;  %1087 = vmatpush.bf16.msra.mxu1 %v1929_v10  ;;  %v330_v4 = vld [vmem:[%s2646_s3 + $0x80] sm:$0xff]  ;;  %v357_v10 = vld [vmem:[%s2654_s2 + $0x38] sm:$0xff] }
  0x91   : > { %1046 = vmatmul.bf16.vlgmr.msrb.gmra.mxu0 %v2695_v61  ;;  %v345_v8 = vpack.c.bf16 %v330_v4, %v327_v3  ;;  %v2707_v12 = vpack.c.bf16 %v360_v11, %v357_v10  ;;  %v376_v4 = vld [vmem:[%s2654_s2 + $0xd0] sm:$0xff]  ;;  %v395_v10 = vld [vmem:[%s2654_s2 + $0x168] sm:$0xff] }
  0x92   : > { %v2798_v6 = vpack.c.bf16 %v379_v5, %v376_v4 }
  0x94   : > { %1088 = vmatpush.bf16.msra.mxu1 %v1921_v19  ;;  %v363_v19 = vld [vmem:[%s2654_s2 + $0x68] sm:$0xff] }
  0x95   : > { %v2719_v21 = vpack.c.bf16 %v366_v20, %v363_v19 }
  0x98   : > { %1089 = vmatpush.bf16.msra.mxu1 %v1913_v30  ;;  %v2734_v30 = vpack.c.bf16 %v372_v29, %v369_v28 }
  0x9b   : > { %1002 = vmatmul.bf16.gmra.mxu3 %v2702_v9 }
  0x9c   : > { %1090 = vmatpush.bf16.msra.mxu1 %v1905_v41  ;;  %v367_v41 = vld [vmem:[%s2654_s2 + $0x88] sm:$0xff] }
  0x9d   : > { %v2754_v42 = vpack.c.bf16 %v367_v41, %v364_v40  ;;  %v388_v40 = vld [vmem:[%s2654_s2 + $0x130] sm:$0xff]  ;;  %v391_v41 = vld [vmem:[%s2654_s2 + $0x148] sm:$0xff] }
  0x9f   : > { %656 = vmatmul.bf16.gmra.mxu1 %v342_v45  ;;  %v383_v45 = vld [vmem:[%s2654_s2 + $0x108] sm:$0xff] }
  0xa0   : > { %695 = vmatmul.bf16.gmra.mxu2 %v349_v48  ;;  %1091 = vmatpush.bf16.msra.mxu1 %v1897_v52  ;;  %v2760_v46 = vpack.c.bf16 %v383_v45, %v380_v44  ;;  %v384_v48 = vld [vmem:[%s2654_s2 + $0x110] sm:$0xff]  ;;  %v370_v52 = vld [vmem:[%s2654_s2 + $0xa0] sm:$0xff] }
  0xa1   : > { %1051 = vmatmul.bf16.gmra.mxu0 %v2707_v12  ;;  %v2766_v50 = vpack.c.bf16 %v384_v48, %v381_v47  ;;  %v2773_v54 = vpack.c.bf16 %v373_v53, %v370_v52  ;;  %v2832_v47 = vpack.c.bf16 %v391_v41, %v388_v40 }
  0xa4   : > { %1092 = vmatpush.bf16.msra.mxu1 %v1889_v60  ;;  %v2781_v60 = vpack.c.bf16 %v389_v58, %v386_v57 }
  0xa8   : > { %1093 = vmatpush.bf16.msra.mxu1 %v1881_v0  ;;  %v2787_v0 = vpack.c.bf16 %v390_v63, %v387_v62 }
  0xab   : > { %1007 = vmatmul.bf16.gmra.mxu3 %v2714_v18 }
  0xac   : > { %1094 = vmatpush.bf16.msra.mxu1 %v1873_v7 }
  0xaf   : > { %661 = vmatmul.bf16.gmra.mxu1 %v345_v8  ;;  %v392_v8 = vld [vmem:[%s2654_s2 + $0x150] sm:$0xff] }
  0xb0   : > { %v2804_v13 = vpack.c.bf16 %v395_v10, %v392_v8  ;;  %v397_v8 = vld [vmem:[%s2654_s2 + $0x178] sm:$0xff] }
  0xb1   : > { %1056 = vmatmul.bf16.gmra.mxu0 %v2719_v21 }
  0xbb   : > { %1012 = vmatmul.bf16.gmra.mxu3 %v2728_v27 }
  0xbf   : > { %666 = vmatmul.bf16.gmra.mxu1 %v348_v17  ;;  %v396_v17 = vld [vmem:[%s2654_s2 + $0x170] sm:$0xff] }
  0xc0   : > { %v2812_v19 = vpack.c.bf16 %v396_v17, %v393_v16 }
  0xc1   : > { %1061 = vmatmul.bf16.gmra.mxu0 %v2734_v30 }
  0xcb   : > { %1017 = vmatmul.bf16.gmra.mxu3 %v2743_v36 }
  0xcf   : > { %1095 = vmatmul.bf16.vlgmr.msra.gmra.mxu1 %v2724_v24 }
  0xd1   : > { %1066 = vmatmul.bf16.gmra.mxu0 %v2749_v39 }
  0xdb   : > { %1022 = vmatmul.bf16.gmra.mxu3 %v2760_v46 }
  0xdf   : > { %1100 = vmatmul.bf16.gmra.mxu1 %v2739_v33 }
  0xe1   : > { %1071 = vmatmul.bf16.gmra.mxu0 %v2766_v50 }
  0xeb   : > { %1027 = vmatmul.bf16.gmra.mxu3 %v2781_v60 }
  0xec   : > { %v2756_v43 = vpop.f32.mrf.mxu1  ;;  %v623_v56 = vpop.f32.mrf.mxu0 }
  0xef   : > { %1105 = vmatmul.bf16.gmra.mxu1 %v2754_v42 }
  0xf1   : > { %1076 = vmatmul.bf16.gmra.mxu0 %v2787_v0 }
  0xf3   : > { %v2779_v59 = vpop.f32.mrf.mxu2 }
  0xf4   : > { %v2768_v51 = vpop.f32.mrf.mxu1  ;;  %v2792_v2 = vpop.f32.mrf.mxu0 }
  0xfb   : > { %v2794_v3 = vpop.f32.mrf.mxu2  ;;  %1032 = vmatmul.bf16.gmra.mxu3 %v2804_v13 }
  0xfc   : > { %v2775_v55 = vpop.f32.mrf.mxu1  ;;  %v628_v14 = vpop.f32.mrf.mxu0 }
  0xff   : > { %1110 = vmatmul.bf16.gmra.mxu1 %v2773_v54 }
 0x101   : > { %1081 = vmatmul.bf16.gmra.mxu0 %v2812_v19 }
 0x103   : > { %v2808_v15 = vpop.f32.mrf.mxu2 }
 0x104   : > { %v2789_v1 = vpop.f32.mrf.mxu1  ;;  %3127 = vst [vmem:[#allocation23_spill] sm:$0xff] %v2808_v15  ;;  %v2819_v25 = vpop.f32.mrf.mxu0 }
 0x10b   : > { %v2823_v28 = vpop.f32.mrf.mxu2 }
 0x10c   : > { %v652_v7 = vpop.f32.mrf.mxu1 }
 0x10d   : > { %v2802_v11 = vadd.f32 %v652_v7, %v623_v56  ;;  %v394_v7 = vld [vmem:[%s2654_s2 + $0x160] sm:$0xff] }
 0x10e   : > { %v998_v32 = vpop.f32.mrf.mxu3  ;;  %v1047_v34 = vpop.f32.mrf.mxu0  ;;  %v2845_v17 = vpack.c.bf16 %v397_v8, %v394_v7 }
 0x10f   : > { %1115 = vmatmul.bf16.gmra.mxu1 %v2798_v6  ;;  %v1048_v35 = vadd.f32 %v1047_v34, %v998_v32 }
 0x110   : > { %3130 = vst [vmem:[#allocation26_spill] sm:$0xff] %v2845_v17 }
 0x113   : > { %v691_v38 = vpop.f32.mrf.mxu2 }
 0x114   : > { %v2814_v20 = vpop.f32.mrf.mxu1 }
 0x116   : > { %v1000_v44 = vpop.f32.mrf.mxu3  ;;  %v1049_v45 = vpop.f32.mrf.mxu0 }
 0x117   : > { %v1050_v7 = vadd.f32 %v1049_v45, %v1000_v44 }
 0x11b   : > { %v693_v53 = vpop.f32.mrf.mxu2 }
 0x11c   : > { %v657_v29 = vpop.f32.mrf.mxu1 }
 0x11d   : > { %v2825_v31 = vadd.f32 %v657_v29, %v628_v14 }
 0x11e   : > { %v1003_v56 = vpop.f32.mrf.mxu3  ;;  %v1052_v57 = vpop.f32.mrf.mxu0 }
 0x11f   : > { %1120 = vmatmul.bf16.gmra.mxu1 %v2821_v26  ;;  %v1053_v58 = vadd.f32 %v1052_v57, %v1003_v56 }
 0x123   : > { %v696_v14 = vpop.f32.mrf.mxu2 }
 0x124   : > { %v2828_v37 = vpop.f32.mrf.mxu1 }
 0x126   : > { %v1054_v16 = vpop.f32.mrf.mxu0 }
 0x12c   : > { %v662_v48 = vpop.f32.mrf.mxu1 }
 0x12d   : > { %v663_v52 = vadd.f32 %v662_v48, %v2756_v43  ;;  %v1005_v43 = vpop.f32.mrf.mxu3 }
 0x12e   : > { %v1057_v29 = vpop.f32.mrf.mxu0 }
 0x12f   : > { %1125 = vmatmul.bf16.gmra.mxu1 %v2832_v47  ;;  %v2837_v4 = vadd.f32 %v691_v38, %v663_v52  ;;  %v698_v38 = vpop.f32.mrf.mxu2  ;;  %v1055_v52 = vadd.f32 %v1054_v16, %v1005_v43  ;;  %v1979_v16 = vld [vmem:[#allocation8 + $0x74] sm:$0xf] }
 0x130   : > { %v1991_v43 = vld [vmem:[#allocation8 + $0xd4] sm:$0xf] }
 0x131   : > { %3128 = vst [vmem:[#allocation24_spill] sm:$0xff] %v2837_v4  ;;  %v1850_v4 = vld [vmem:[#allocation8 + $0xd8] sm:$0xf0] }
 0x134   : > { %v664_v62 = vpop.f32.mrf.mxu1 }
 0x135   : > { %v665_v63 = vadd.f32 %v664_v62, %v2768_v51  ;;  %v1008_v51 = vpop.f32.mrf.mxu3 }
 0x136   : > { %v1058_v32 = vadd.f32 %v1057_v29, %v1008_v51  ;;  %v1059_v56 = vpop.f32.mrf.mxu0 }
 0x137   : > { %v2839_v5 = vadd.f32 %v693_v53, %v665_v63 }
 0x139   : > { %3129 = vst [vmem:[#allocation25_spill] sm:$0xff] %v2839_v5  ;;  %v2011_v5 = vld [vmem:[#allocation8 + $0x174] sm:$0xf] }
 0x13c   : > { %v667_v22 = vpop.f32.mrf.mxu1 }
 0x13d   : > { %v668_v23 = vadd.f32 %v667_v22, %v2775_v55  ;;  %v1010_v53 = vpop.f32.mrf.mxu3 }
 0x13e   : > { %v1062_v63 = vpop.f32.mrf.mxu0 }
 0x13f   : > { %1130 = vmatmul.bf16.gmra.mxu1 %v2845_v17  ;;  %v2850_v41 = vadd.f32 %v696_v14, %v668_v23 }
 0x141   : > { %3131 = vst [vmem:[#allocation27_spill] sm:$0xff] %v2850_v41  ;;  %v1786_v41 = vld [vmem:[#allocation8 + $0x58] sm:$0xf0] }
 0x144   : > { %v669_v34 = vpop.f32.mrf.mxu1 }
 0x145   : > { %v670_v40 = vadd.f32 %v669_v34, %v2789_v1  ;;  %v1013_v62 = vpop.f32.mrf.mxu3 }
 0x146   : > { %v1063_v8 = vadd.f32 %v1062_v63, %v1013_v62  ;;  %v1064_v23 = vpop.f32.mrf.mxu0 }
 0x147   : > { %v2852_v48 = vadd.f32 %v698_v38, %v670_v40 }
 0x149   : > { %3132 = vst [vmem:[#allocation28_spill] sm:$0xff] %v2852_v48 }
 0x14c   : > { %v1096_v57 = vpop.f32.mrf.mxu1 }
 0x14d   : > { %v2856_v55 = vadd.f32 %v1096_v57, %v1048_v35  ;;  %v1015_v14 = vpop.f32.mrf.mxu3 }
 0x14e   : > { %v1067_v40 = vpop.f32.mrf.mxu0 }
 0x154   : > { %v1098_v22 = vpop.f32.mrf.mxu1 }
 0x155   : > { %v2858_v51 = vadd.f32 %v1098_v22, %v1050_v7  ;;  %v1018_v38 = vpop.f32.mrf.mxu3 }
 0x156   : > { %v2864_v35 = vadd.f32 %v1067_v40, %v1018_v38  ;;  %v1069_v62 = vpop.f32.mrf.mxu0  ;;  %v1995_v38 = vld [vmem:[#allocation8 + $0xf4] sm:$0xf] }
 0x15c   : > { %v1101_v29 = vpop.f32.mrf.mxu1 }
 0x15d   : > { %v2862_v34 = vadd.f32 %v1101_v29, %v1053_v58  ;;  %v1020_v45 = vpop.f32.mrf.mxu3  ;;  %v1060_v58 = vadd.f32 %v1059_v56, %v1010_v53  ;;  %v1993_v53 = vld [vmem:[#allocation8 + $0xe4] sm:$0xf] }
 0x15e   : > { %v2870_v63 = vadd.f32 %v1069_v62, %v1020_v45 }
 0x164   : > { %v1103_v57 = vpop.f32.mrf.mxu1 }
 0x165   : > { %v2866_v10 = vadd.f32 %v1103_v57, %v1055_v52  ;;  %v1802_v52 = vld [vmem:[#allocation8 + $0x78] sm:$0xf0] }
 0x166   : > { %v1805_v40 = vor.u32 %v1979_v16, %v1802_v52  ;;  %v1866_v57 = vld [vmem:[#allocation8 + $0xf8] sm:$0xf0] }
 0x167   : > { %v1869_v44 = vor.u32 %v1995_v38, %v1866_v57  ;;  %v1930_v52 = vld [vmem:[#allocation8 + $0x178] sm:$0xf0]  ;;  %v1853_v38 = vor.u32 %v1991_v43, %v1850_v4 }
 0x168   : > { %1136 = vmatpush.bf16.msrb.mxu2 %v1805_v40  ;;  %v1065_v40 = vadd.f32 %v1064_v23, %v1015_v14  ;;  %v1770_v14 = vld [vmem:[#allocation8 + $0x38] sm:$0xf0]  ;;  %v1987_v23 = vld [vmem:[#allocation8 + $0xb4] sm:$0xf] }
 0x169   : > { %1185 = vmatpush.bf16.msrb.mxu3 %v1869_v44  ;;  %v1933_v44 = vor.u32 %v2011_v5, %v1930_v52  ;;  %v1971_v5 = vld [vmem:[#allocation8 + $0x34] sm:$0xf] }
 0x16a   : > { %v1773_v43 = vor.u32 %v1971_v5, %v1770_v14  ;;  %v2007_v52 = vld [vmem:[#allocation8 + $0x154] sm:$0xf]  ;;  %v1826_v5 = vld [vmem:[#allocation8 + $0xa8] sm:$0xf0]  ;;  %v2005_v14 = vld [vmem:[#allocation8 + $0x144] sm:$0xf] }
 0x16b   : > { %1234 = vmatpush.bf16.msra.mxu0 %v1933_v44 }
 0x16c   : > { %v1106_v7 = vpop.f32.mrf.mxu1 }
 0x16d   : > { %v2872_v22 = vadd.f32 %v1106_v7, %v1058_v32  ;;  %v1977_v32 = vld [vmem:[#allocation8 + $0x64] sm:$0xf]  ;;  %v1794_v7 = vld [vmem:[#allocation8 + $0x68] sm:$0xf0] }
 0x16e   : > { %v1797_v56 = vor.u32 %v1977_v32, %v1794_v7  ;;  %v1973_v32 = vld [vmem:[#allocation8 + $0x44] sm:$0xf]  ;;  %v1778_v7 = vld [vmem:[#allocation8 + $0x48] sm:$0xf0] }
 0x170   : > { %1137 = vmatpush.bf16.msrb.mxu2 %v1797_v56  ;;  %v1842_v56 = vld [vmem:[#allocation8 + $0xc8] sm:$0xf0] }
 0x174   : > { %v1108_v29 = vpop.f32.mrf.mxu1 }
 0x175   : > { %v2874_v1 = vadd.f32 %v1108_v29, %v1060_v58  ;;  %v1858_v58 = vld [vmem:[#allocation8 + $0xe8] sm:$0xf0]  ;;  %v1975_v29 = vld [vmem:[#allocation8 + $0x54] sm:$0xf] }
 0x176   : > { %v1861_v48 = vor.u32 %v1993_v53, %v1858_v58  ;;  %v1789_v16 = vor.u32 %v1975_v29, %v1786_v41  ;;  %v1989_v53 = vld [vmem:[#allocation8 + $0xc4] sm:$0xf]  ;;  %v1781_v58 = vor.u32 %v1973_v32, %v1778_v7  ;;  %v1922_v29 = vld [vmem:[#allocation8 + $0x168] sm:$0xf0]  ;;  %v2887_v7 = vpop.f32.mrf.mxu3 }
 0x177   : > { %v2009_v41 = vld [vmem:[#allocation8 + $0x164] sm:$0xf] }
 0x178   : > { %1186 = vmatpush.bf16.msrb.mxu3 %v1861_v48  ;;  %1138 = vmatpush.bf16.msrb.mxu2 %v1789_v16  ;;  %v1845_v48 = vor.u32 %v1989_v53, %v1842_v56  ;;  %v1925_v4 = vor.u32 %v2009_v41, %v1922_v29  ;;  %v1834_v16 = vld [vmem:[#allocation8 + $0xb8] sm:$0xf0]  ;;  %v1969_v53 = vld [vmem:[#allocation8 + $0x24] sm:$0xf]  ;;  %v1762_v56 = vld [vmem:[#allocation8 + $0x28] sm:$0xf0]  ;;  %v2889_v29 = vpop.f32.mrf.mxu0 }
 0x179   : > { %v1837_v44 = vor.u32 %v1987_v23, %v1834_v16  ;;  %v1985_v41 = vld [vmem:[#allocation8 + $0xa4] sm:$0xf]  ;;  %v1967_v23 = vld [vmem:[#allocation8 + $0x14] sm:$0xf]  ;;  %v1754_v16 = vld [vmem:[#allocation8 + $0x18] sm:$0xf0] }
 0x17a   : > { %1235 = vmatpush.bf16.msra.mxu0 %v1925_v4  ;;  %v1757_v17 = vor.u32 %v1967_v23, %v1754_v16  ;;  %v1890_v23 = vld [vmem:[#allocation8 + $0x128] sm:$0xf0] }
 0x17c   : > { %v1111_v45 = vpop.f32.mrf.mxu1  ;;  %1187 = vmatpush.bf16.msrb.mxu3 %v1853_v38  ;;  %1139 = vmatpush.bf16.msrb.mxu2 %v1781_v58  ;;  %v1914_v38 = vld [vmem:[#allocation8 + $0x158] sm:$0xf0]  ;;  %v1765_v58 = vor.u32 %v1969_v53, %v1762_v56 }
 0x17d   : > { %v2878_v62 = vadd.f32 %v1111_v45, %v1063_v8  ;;  %v1906_v45 = vld [vmem:[#allocation8 + $0x148] sm:$0xf0] }
 0x17e   : > { %v1909_v4 = vor.u32 %v2005_v14, %v1906_v45 }
 0x180   : > { %1188 = vmatpush.bf16.msrb.mxu3 %v1845_v48  ;;  %1140 = vmatpush.bf16.msrb.mxu2 %v1773_v43  ;;  %v1829_v48 = vor.u32 %v1985_v41, %v1826_v5  ;;  %v1746_v41 = vld [vmem:[#allocation8 + $0x8] sm:$0xf0]  ;;  %v1981_v5 = vld [vmem:[#allocation8 + $0x84] sm:$0xf] }
 0x184   : > { %v1113_v8 = vpop.f32.mrf.mxu1  ;;  %1189 = vmatpush.bf16.msrb.mxu3 %v1837_v44  ;;  %1141 = vmatpush.bf16.msrb.mxu2 %v1765_v58  ;;  %v1025_v44 = vpop.f32.mrf.mxu3 }
 0x185   : > { %v2880_v57 = vadd.f32 %v1113_v8, %v1065_v40  ;;  %v1917_v40 = vor.u32 %v2007_v52, %v1914_v38  ;;  %v1818_v52 = vld [vmem:[#allocation8 + $0x98] sm:$0xf0]  ;;  %v2003_v38 = vld [vmem:[#allocation8 + $0x134] sm:$0xf]  ;;  %v1074_v58 = vpop.f32.mrf.mxu0 }
 0x187   : > { %1236 = vmatpush.bf16.msra.mxu0 %v1917_v40  ;;  %v1965_v40 = vld [vmem:[#allocation8 + $0x4] sm:$0xf] }
 0x188   : > { %1190 = vmatpush.bf16.msrb.mxu3 %v1829_v48  ;;  %1142 = vmatpush.bf16.msrb.mxu2 %v1757_v17  ;;  %v1749_v14 = vor.u32 %v1965_v40, %v1746_v41  ;;  %v1810_v48 = vld [vmem:[#allocation8 + $0x88] sm:$0xf0] }
 0x189   : > { %v1813_v16 = vor.u32 %v1981_v5, %v1810_v48 }
 0x18b   : > { %1237 = vmatpush.bf16.msra.mxu0 %v1909_v4  ;;  %v2001_v4 = vld [vmem:[#allocation8 + $0x124] sm:$0xf] }
 0x18c   : > { %v1116_v8 = vpop.f32.mrf.mxu1  ;;  %1143 = vmatpush.bf16.msrb.mxu2 %v1749_v14 }
 0x18d   : > { %v2885_v32 = vadd.f32 %v1116_v8, %v2864_v35  ;;  %v1983_v35 = vld [vmem:[#allocation8 + $0x94] sm:$0xf]  ;;  %v1898_v8 = vld [vmem:[#allocation8 + $0x138] sm:$0xf0]  ;;  %v1077_v40 = vpop.f32.mrf.mxu0 }
 0x18e   : > { %v1821_v15 = vor.u32 %v1983_v35, %v1818_v52  ;;  %v1901_v43 = vor.u32 %v2003_v38, %v1898_v8  ;;  %v1893_v35 = vor.u32 %v2001_v4, %v1890_v23  ;;  %v1999_v52 = vld [vmem:[#allocation8 + $0x114] sm:$0xf]  ;;  %v1874_v8 = vld [vmem:[#allocation8 + $0x108] sm:$0xf0] }
 0x18f   : > { %1144 = vmatmul.bf16.vlgmr.msrb.gmra.mxu2 %v2690_v49 }
 0x190   : > { %1191 = vmatpush.bf16.msrb.mxu3 %v1821_v15  ;;  %1238 = vmatpush.bf16.msra.mxu0 %v1901_v43  ;;  %v1997_v15 = vld [vmem:[#allocation8 + $0x104] sm:$0xf] }
 0x191   : > { %v1877_v43 = vor.u32 %v1997_v15, %v1874_v8 }
 0x194   : > { %v1118_v53 = vpop.f32.mrf.mxu1  ;;  %1192 = vmatpush.bf16.msrb.mxu3 %v1813_v16  ;;  %1239 = vmatpush.bf16.msra.mxu0 %v1893_v35 }
 0x195   : > { %v2892_v56 = vadd.f32 %v1118_v53, %v2870_v63  ;;  %v1882_v63 = vld [vmem:[#allocation8 + $0x118] sm:$0xf0]  ;;  %v1028_v53 = vpop.f32.mrf.mxu3  ;;  %v1079_v14 = vpop.f32.mrf.mxu0 }
 0x196   : > { %v1885_v17 = vor.u32 %v1999_v52, %v1882_v63 }
 0x197   : > { %v1287_v45 = vpack.c.bf16 %v2892_v56, %v2885_v32  ;;  %1193 = vmatmul.bf16.vlgmr.msrb.gmra.mxu3 %v2695_v61  ;;  %v3143_v56 = vld [vmem:[#allocation27_spill] sm:$0xff] }
 0x198   : > { %1240 = vmatpush.bf16.msra.mxu0 %v1885_v17 }
 0x19c   : > { %v1121_v38 = vpop.f32.mrf.mxu1  ;;  %1241 = vmatpush.bf16.msra.mxu0 %v1877_v43 }
 0x19d   : > { %v1030_v5 = vpop.f32.mrf.mxu3  ;;  %v1082_v23 = vpop.f32.mrf.mxu0 }
 0x19e   : > { %v1080_v8 = vadd.f32 %v1079_v14, %v1030_v5 }
 0x19f   : > { %1242 = vmatmul.bf16.vlgmr.msra.gmra.mxu0 %v2724_v24  ;;  %1149 = vmatmul.bf16.gmra.mxu2 %v2702_v9 }
 0x1a4   : > { %v1123_v41 = vpop.f32.mrf.mxu1 }
 0x1a5   : > { %v1033_v4 = vpop.f32.mrf.mxu3  ;;  %v1084_v35 = vpop.f32.mrf.mxu0 }
 0x1a6   : > { %v1083_v24 = vadd.f32 %v1082_v23, %v1033_v4  ;;  %v1075_v4 = vadd.f32 %v1074_v58, %v1025_v44 }
 0x1a7   : > { %1198 = vmatmul.bf16.gmra.mxu3 %v2707_v12  ;;  %v1078_v12 = vadd.f32 %v1077_v40, %v1028_v53 }
 0x1a8   : > { %v1124_v23 = vadd.f32 %v1123_v41, %v1075_v4 }
 0x1ac   : > { %v1126_v48 = vpop.f32.mrf.mxu1 }
 0x1ad   : > { %v1035_v16 = vpop.f32.mrf.mxu3 }
 0x1ae   : > { %v1085_v52 = vadd.f32 %v1084_v35, %v1035_v16 }
 0x1af   : > { %1247 = vmatmul.bf16.gmra.mxu0 %v2739_v33  ;;  %1154 = vmatmul.bf16.gmra.mxu2 %v2714_v18  ;;  %v1127_v33 = vadd.f32 %v1126_v48, %v1078_v12 }
 0x1b4   : > { %v1128_v49 = vpop.f32.mrf.mxu1 }
 0x1b5   : > { %v1129_v43 = vadd.f32 %v1128_v49, %v1080_v8 }
 0x1b7   : > { %1203 = vmatmul.bf16.gmra.mxu3 %v2719_v21  ;;  %v1289_v18 = vpack.c.bf16 %v1129_v43, %v1127_v33  ;;  %v1073_v21 = vadd.f32 %v2889_v29, %v2887_v7  ;;  %v3142_v29 = vld [vmem:[#allocation28_spill] sm:$0xff] }
 0x1bc   : > { %v1131_v61 = vpop.f32.mrf.mxu1 }
 0x1bd   : > { %v1132_v17 = vadd.f32 %v1131_v61, %v1083_v24  ;;  %v1122_v61 = vadd.f32 %v1121_v38, %v1073_v21 }
 0x1bf   : > { %1252 = vmatmul.bf16.gmra.mxu0 %v2754_v42  ;;  %1159 = vmatmul.bf16.gmra.mxu2 %v2728_v27  ;;  %v1288_v42 = vpack.c.bf16 %v1124_v23, %v1122_v61  ;;  %v3133_v27 = vpack.c.bf16 %v2880_v57, %v2878_v62 }
 0x1c4   : > { %v1133_v63 = vpop.f32.mrf.mxu1 }
 0x1c5   : > { %v1134_v15 = vadd.f32 %v1133_v63, %v1085_v52 }
 0x1c7   : > { %v1290_v9 = vpack.c.bf16 %v1134_v15, %v1132_v17  ;;  %1208 = vmatmul.bf16.gmra.mxu3 %v2734_v30  ;;  %v3134_v30 = vpack.c.bf16 %v2874_v1, %v2872_v22 }
 0x1c9   : > { %1303 = vmatpush.bf16.xpose.msrb.mxu1 %v1290_v9 }
 0x1cf   : > { %1257 = vmatmul.bf16.gmra.mxu0 %v2773_v54  ;;  %1164 = vmatmul.bf16.gmra.mxu2 %v2743_v36  ;;  %v3135_v36 = vpack.c.bf16 %v2866_v10, %v2862_v34  ;;  %v682_v54 = vadd.f32 %v2779_v59, %v2802_v11 }
 0x1d1   : > { %1304 = vmatpush.bf16.xpose.msrb.mxu1 %v1289_v18 }
 0x1d7   : > { %1213 = vmatmul.bf16.gmra.mxu3 %v2749_v39  ;;  %v655_v39 = vadd.f32 %v2814_v20, %v2792_v2  ;;  %v3137_v2 = vld [vmem:[#allocation23_spill] sm:$0xff] }
 0x1d8   : > { %v687_v20 = vadd.f32 %v3137_v2, %v2825_v31 }
 0x1d9   : > { %1305 = vmatpush.bf16.xpose.msrb.mxu1 %v1288_v42 }
 0x1df   : > { %1262 = vmatmul.bf16.gmra.mxu0 %v2798_v6  ;;  %1169 = vmatmul.bf16.gmra.mxu2 %v2760_v46  ;;  %v3136_v46 = vpack.c.bf16 %v2858_v51, %v2856_v55  ;;  %v3140_v51 = vld [vmem:[#allocation24_spill] sm:$0xff] }
 0x1e1   : > { %1306 = vmatpush.bf16.xpose.msrb.mxu1 %v1287_v45  ;;  %v3144_v45 = vpack.c.bf16 %v3142_v29, %v3143_v56 }
 0x1e7   : > { %1218 = vmatmul.bf16.gmra.mxu3 %v2766_v50  ;;  %v684_v50 = vadd.f32 %v2794_v3, %v655_v39 }
 0x1e9   : > { %1307 = vmatpush.bf16.xpose.msrb.mxu1 %v3133_v27  ;;  %v1299_v6 = vpack.c.bf16 %v684_v50, %v682_v54 }
 0x1ef   : > { %1267 = vmatmul.bf16.gmra.mxu0 %v2821_v26  ;;  %1174 = vmatmul.bf16.gmra.mxu2 %v2781_v60  ;;  %v660_v60 = vadd.f32 %v2828_v37, %v2819_v25  ;;  %v3138_v26 = vld [vmem:[#allocation26_spill] sm:$0xff] }
 0x1f1   : > { %1308 = vmatpush.bf16.xpose.msrb.mxu1 %v3134_v30 }
 0x1f7   : > { %1223 = vmatmul.bf16.gmra.mxu3 %v2787_v0  ;;  %v689_v0 = vadd.f32 %v2823_v28, %v660_v60 }
 0x1f9   : > { %1309 = vmatpush.bf16.xpose.msrb.mxu1 %v3135_v36  ;;  %v1300_v3 = vpack.c.bf16 %v689_v0, %v687_v20  ;;  %v1333_v20 = vlaneseq }
 0x1ff   : > { %1272 = vmatmul.bf16.gmra.mxu0 %v2832_v47  ;;  %1179 = vmatmul.bf16.gmra.mxu2 %v2804_v13  ;;  %v3139_v13 = vld [vmem:[#allocation25_spill] sm:$0xff] }
 0x200   : > { %v3141_v25 = vpack.c.bf16 %v3139_v13, %v3140_v51  ;;  %v2988_v13 = vand.u32 127, %v1333_v20 }
 0x201   : > { %1310 = vmatpush.bf16.xpose.msrb.mxu1 %v3136_v46 }
 0x207   : > { %1228 = vmatmul.bf16.gmra.mxu3 %v2812_v19 }
 0x208   : > { %1311 = vmatmul.bf16.vlgmr.msrb.gmra.mxu1 %v1299_v6 }
 0x20f   : > { %1277 = vmatmul.bf16.gmra.mxu0 %v3138_v26 }
 0x212   : > { %v1145_v59 = vpop.f32.mrf.mxu2 }
 0x218   : > { %1316 = vmatmul.bf16.gmra.mxu1 %v1300_v3 }
 0x21a   : > { %v1194_v11 = vpop.f32.mrf.mxu3  ;;  %v1147_v19 = vpop.f32.mrf.mxu2 }
 0x21b   : > { %v1195_v47 = vadd.f32 %v1194_v11, %v1145_v59  ;;  %v2982_v59 = vshrl.u32 %v1333_v20, 7 }
 0x21c   : > { %v1243_v10 = vpop.f32.mrf.mxu0 }
 0x21d   : > { %v2947_v55 = vadd.f32 %v1243_v10, %v1195_v47  ;;  %v2984_v47 = vstv %s1934_s26 }
 0x21e   : > { %v1343_v10 = vadd.s32 %v2984_v47, %v2982_v59 }
 0x220   : > { %vm1353_vm0 = vcmp.le.s32.totalorder %v2988_v13, %v1343_v10 }
 0x222   : > { %v1196_v37 = vpop.f32.mrf.mxu3  ;;  %v1150_v22 = vpop.f32.mrf.mxu2 }
 0x223   : > { %v1197_v28 = vadd.f32 %v1196_v37, %v1147_v19  ;;  %v1335_v19 = vadd.s32 8, %v2982_v59 }
 0x224   : > { %v1245_v1 = vpop.f32.mrf.mxu0 }
 0x225   : > { %v2952_v34 = vadd.f32 %v1245_v1, %v1197_v28 }
 0x227   : > { %v1291_v31 = vpack.c.bf16 %v2952_v34, %v2947_v55 }
 0x228   : > { %1321 = vmatmul.bf16.gmra.mxu1 %v3141_v25 }
 0x22a   : > { %v1199_v62 = vpop.f32.mrf.mxu3  ;;  %v1152_v44 = vpop.f32.mrf.mxu2 }
 0x22b   : > { %v1200_v57 = vadd.f32 %v1199_v62, %v1150_v22  ;;  %v1344_v22 = vadd.s32 %v2984_v47, %v1335_v19 }
 0x22c   : > { %v1248_v32 = vpop.f32.mrf.mxu0 }
 0x22d   : > { %v2956_v7 = vadd.f32 %v1248_v32, %v1200_v57  ;;  %vm1354_vm1 = vcmp.le.s32.totalorder %v2988_v13, %v1344_v22  ;;  %v1336_v32 = vadd.s32 16, %v2982_v59 }
 0x232   : > { %v1201_v58 = vpop.f32.mrf.mxu3  ;;  %v1155_v5 = vpop.f32.mrf.mxu2 }
 0x233   : > { %v1202_v38 = vadd.f32 %v1201_v58, %v1152_v44  ;;  %v1345_v44 = vadd.s32 %v2984_v47, %v1336_v32 }
 0x234   : > { %v1250_v53 = vpop.f32.mrf.mxu0 }
 0x235   : > { %v2961_v40 = vadd.f32 %v1250_v53, %v1202_v38  ;;  %vm1355_vm2 = vcmp.le.s32.totalorder %v2988_v13, %v1345_v44  ;;  %v1337_v53 = vadd.s32 24, %v2982_v59 }
 0x237   : > { %v1292_v41 = vpack.c.bf16 %v2961_v40, %v2956_v7 }
 0x238   : > { %1326 = vmatmul.bf16.gmra.mxu1 %v3144_v45 }
 0x23a   : > { %v1204_v14 = vpop.f32.mrf.mxu3  ;;  %v1157_v35 = vpop.f32.mrf.mxu2 }
 0x23b   : > { %v1205_v48 = vadd.f32 %v1204_v14, %v1155_v5 }
 0x23c   : > { %v1253_v49 = vpop.f32.mrf.mxu0 }
 0x23d   : > { %v2965_v16 = vadd.f32 %v1253_v49, %v1205_v48 }
 0x242   : > { %v1206_v24 = vpop.f32.mrf.mxu3  ;;  %v1160_v9 = vpop.f32.mrf.mxu2 }
 0x243   : > { %v1207_v52 = vadd.f32 %v1206_v24, %v1157_v35  ;;  %v1346_v35 = vadd.s32 %v2984_v47, %v1337_v53 }
 0x244   : > { %v1255_v63 = vpop.f32.mrf.mxu0 }
 0x245   : > { %v2967_v17 = vadd.f32 %v1255_v63, %v1207_v52  ;;  %vm1356_vm3 = vcmp.le.s32.totalorder %v2988_v13, %v1346_v35 }
 0x247   : > { %v1293_v15 = vpack.c.bf16 %v2967_v17, %v2965_v16 }
 0x24a   : > { %v1209_v12 = vpop.f32.mrf.mxu3  ;;  %v1162_v18 = vpop.f32.mrf.mxu2 }
 0x24b   : > { %v1210_v8 = vadd.f32 %v1209_v12, %v1160_v9 }
 0x24c   : > { %v1258_v43 = vpop.f32.mrf.mxu0 }
 0x24d   : > { %v2971_v33 = vadd.f32 %v1258_v43, %v1210_v8 }
 0x252   : > { %v1211_v21 = vpop.f32.mrf.mxu3  ;;  %v1165_v27 = vpop.f32.mrf.mxu2 }
 0x253   : > { %v1212_v4 = vadd.f32 %v1211_v21, %v1162_v18  ;;  %v1338_v18 = vadd.s32 32, %v2982_v59 }
 0x254   : > { %v1260_v23 = vpop.f32.mrf.mxu0 }
 0x255   : > { %v2973_v61 = vadd.f32 %v1260_v23, %v1212_v4  ;;  %v1347_v10 = vadd.s32 %v2984_v47, %v1338_v18 }
 0x257   : > { %v1294_v42 = vpack.c.bf16 %v2973_v61, %v2971_v33  ;;  %vm1357_vm4 = vcmp.le.s32.totalorder %v2988_v13, %v1347_v10 }
 0x25a   : > { %v1214_v30 = vpop.f32.mrf.mxu3  ;;  %v1167_v50 = vpop.f32.mrf.mxu2 }
 0x25b   : > { %v1215_v36 = vadd.f32 %v1214_v30, %v1165_v27 }
 0x25c   : > { %v1263_v39 = vpop.f32.mrf.mxu0 }
 0x25d   : > { %v2977_v46 = vadd.f32 %v1263_v39, %v1215_v36 }
 0x262   : > { %v1216_v54 = vpop.f32.mrf.mxu3  ;;  %v1170_v60 = vpop.f32.mrf.mxu2 }
 0x264   : > { %v2979_v6 = vpop.f32.mrf.mxu0 }
 0x26a   : > { %v1219_v0 = vpop.f32.mrf.mxu3  ;;  %v1172_v3 = vpop.f32.mrf.mxu2 }
 0x26b   : > { %v1220_v43 = vadd.f32 %v1219_v0, %v1170_v60  ;;  %v1339_v60 = vadd.s32 40, %v2982_v59 }
 0x26c   : > { %v1268_v2 = vpop.f32.mrf.mxu0 }
 0x26d   : > { %v1348_v22 = vadd.s32 %v2984_v47, %v1339_v60 }
 0x26f   : > { %vm1358_vm5 = vcmp.le.s32.totalorder %v2988_v13, %v1348_v22 }
 0x272   : > { %v1221_v26 = vpop.f32.mrf.mxu3  ;;  %v1175_v51 = vpop.f32.mrf.mxu2 }
 0x273   : > { %v1222_v4 = vadd.f32 %v1221_v26, %v1172_v3 }
 0x274   : > { %v1270_v11 = vpop.f32.mrf.mxu0 }
 0x275   : > { %v1271_v19 = vadd.f32 %v1270_v11, %v1222_v4  ;;  %v1341_v11 = vadd.s32 56, %v2982_v59 }
 0x277   : > { %v1350_v32 = vadd.s32 %v2984_v47, %v1341_v11 }
 0x279   : > { %vm1360_vm7 = vcmp.le.s32.totalorder %v2988_v13, %v1350_v32 }
 0x27a   : > { %v1224_v25 = vpop.f32.mrf.mxu3  ;;  %v1177_v62 = vpop.f32.mrf.mxu2 }
 0x27b   : > { %v1225_v24 = vadd.f32 %v1224_v25, %v1175_v51  ;;  %v1217_v51 = vadd.f32 %v1216_v54, %v1167_v50  ;;  %v1269_v25 = vadd.f32 %v1268_v2, %v1220_v43  ;;  %v1340_v50 = vadd.s32 48, %v2982_v59 }
 0x27c   : > { %v1273_v37 = vpop.f32.mrf.mxu0 }
 0x27d   : > { %v1274_v23 = vadd.f32 %v1273_v37, %v1225_v24  ;;  %v1266_v0 = vadd.f32 %v2979_v6, %v1217_v51  ;;  %v1296_v3 = vpack.c.bf16 %v1271_v19, %v1269_v25  ;;  %v1349_v6 = vadd.s32 %v2984_v47, %v1340_v50 }
 0x27f   : > { %vm1359_vm6 = vcmp.le.s32.totalorder %v2988_v13, %v1349_v6 }
 0x282   : > { %v1226_v57 = vpop.f32.mrf.mxu3  ;;  %v1180_v58 = vpop.f32.mrf.mxu2 }
 0x283   : > { %v1227_v52 = vadd.f32 %v1226_v57, %v1177_v62  ;;  %v1295_v62 = vpack.c.bf16 %v1266_v0, %v2977_v46 }
 0x284   : > { %v1275_v29 = vpop.f32.mrf.mxu0 }
 0x285   : > { %v1312_v28 = vpop.f32.mrf.mxu1  ;;  %v1276_v27 = vadd.f32 %v1275_v29, %v1227_v52 }
 0x286   : > { %v2992_v1 = vsel %vm1353_vm0, %v1312_v28, -inf }
 0x287   : > { %1369 = vmax.xlane.f32.xlu0 %v2992_v1  ;;  %v1297_v28 = vpack.c.bf16 %v1276_v27, %v1274_v23 }
 0x28a   : > { %v1229_v38 = vpop.f32.mrf.mxu3  ;;  %v1182_v63 = vpop.f32.mrf.mxu2 }
 0x28b   : > { %v1230_v49 = vadd.f32 %v1229_v38, %v1180_v58 }
 0x28c   : > { %v1278_v5 = vpop.f32.mrf.mxu0 }
 0x28d   : > { %v1314_v56 = vpop.f32.mrf.mxu1  ;;  %v1279_v12 = vadd.f32 %v1278_v5, %v1230_v49 }
 0x28e   : > { %v2998_v45 = vsel %vm1354_vm1, %v1314_v56, -inf }
 0x28f   : > { %1371 = vmax.xlane.f32.xlu0 %v2998_v45 }
 0x292   : > { %v1231_v9 = vpop.f32.mrf.mxu3 }
 0x293   : > { %v1232_v8 = vadd.f32 %v1231_v9, %v1182_v63 }
 0x294   : > { %v1280_v21 = vpop.f32.mrf.mxu0 }
 0x295   : > { %v1317_v14 = vpop.f32.mrf.mxu1  ;;  %v1281_v30 = vadd.f32 %v1280_v21, %v1232_v8 }
 0x296   : > { %v3004_v48 = vsel %vm1355_vm2, %v1317_v14, -inf }
 0x297   : > { %1373 = vmax.xlane.f32.xlu1 %v3004_v48  ;;  %v1298_v20 = vpack.c.bf16 %v1281_v30, %v1279_v12 }
 0x299   : > { %1445 = vmatpush.bf16.msra.mxu2 %v1298_v20 }
 0x29d   : > { %v1319_v36 = vpop.f32.mrf.mxu1  ;;  %1446 = vmatpush.bf16.msra.mxu2 %v1297_v28 }
 0x29e   : > { %v1364_v39 = vsel %vm1356_vm3, %v1319_v36, -inf }
 0x29f   : > { %1375 = vmax.xlane.f32.xlu1 %v1364_v39 }
 0x2a1   : > { %1447 = vmatpush.bf16.msra.mxu2 %v1296_v3 }
 0x2a5   : > { %v1322_v26 = vpop.f32.mrf.mxu1  ;;  %1448 = vmatpush.bf16.msra.mxu2 %v1295_v62 }
 0x2a6   : > { %v1365_v37 = vsel %vm1357_vm4, %v1322_v26, -inf }
 0x2a7   : > { %1377 = vmax.xlane.f32.xlu2 %v1365_v37 }
 0x2a9   : > { %1449 = vmatpush.bf16.msra.mxu2 %v1294_v42 }
 0x2ad   : > { %v1324_v54 = vpop.f32.mrf.mxu1  ;;  %1450 = vmatpush.bf16.msra.mxu2 %v1293_v15 }
 0x2ae   : > { %v1366_v2 = vsel %vm1358_vm5, %v1324_v54, -inf }
 0x2af   : > { %1379 = vmax.xlane.f32.xlu2 %v1366_v2 }
 0x2b1   : > { %1451 = vmatpush.bf16.msra.mxu2 %v1292_v41 }
 0x2b5   : > { %v1327_v46 = vpop.f32.mrf.mxu1  ;;  %1452 = vmatpush.bf16.msra.mxu2 %v1291_v31 }
 0x2b6   : > { %v1367_v57 = vsel %vm1359_vm6, %v1327_v46, -inf }
 0x2b7   : > { %1381 = vmax.xlane.f32.xlu0 %v1367_v57 }
 0x2bd   : > { %v1329_v33 = vpop.f32.mrf.mxu1 }
 0x2be   : > { %v1368_v61 = vsel %vm1360_vm7, %v1329_v33, -inf }
 0x2bf   : > { %1383 = vmax.xlane.f32.xlu1 %v1368_v61 }
 0x2fa   : > { %v1370_v16 = vpop.xlane.xlu0 %1369 }
 0x2fb   : > { %v1385_v17 = vsub.f32 %v2992_v1, %v1370_v16 }
 0x2fd   : > { %v1393_v15 = vmul.f32 1.442695, %v1385_v17 }
 0x2ff   : > { %2164 = vpow2.f32 %v1393_v15 }
 0x302   : > { %v1372_v42 = vpop.xlane.xlu0 %1371 }
 0x303   : > { %v1386_v59 = vsub.f32 %v2998_v45, %v1372_v42 }
 0x305   : > { %v2165_v47 = vpop.eup %2164  ;;  %v1395_v7 = vmul.f32 1.442695, %v1386_v59 }
 0x306   : > { %1409 = vadd.xlane.f32.xlu2 %v2165_v47 }
 0x307   : > { %2166 = vpow2.f32 %v1395_v7 }
 0x30a   : > { %v1374_v40 = vpop.xlane.xlu1 %1373 }
 0x30b   : > { %v1387_v41 = vsub.f32 %v3004_v48, %v1374_v40 }
 0x30d   : > { %v2167_v55 = vpop.eup %2166  ;;  %v1397_v34 = vmul.f32 1.442695, %v1387_v41 }
 0x30e   : > { %1411 = vadd.xlane.f32.xlu0 %v2167_v55 }
 0x30f   : > { %2168 = vpow2.f32 %v1397_v34 }
 0x312   : > { %v1376_v31 = vpop.xlane.xlu1 %1375 }
 0x313   : > { %v1388_v13 = vsub.f32 %v1364_v39, %v1376_v31 }
 0x315   : > { %v2169_v29 = vpop.eup %2168  ;;  %v1399_v1 = vmul.f32 1.442695, %v1388_v13 }
 0x316   : > { %1413 = vadd.xlane.f32.xlu1 %v2169_v29 }
 0x317   : > { %2170 = vpow2.f32 %v1399_v1 }
 0x31a   : > { %v1378_v56 = vpop.xlane.xlu2 %1377 }
 0x31b   : > { %v1389_v44 = vsub.f32 %v1365_v37, %v1378_v56 }
 0x31d   : > { %v2171_v45 = vpop.eup %2170  ;;  %v1401_v58 = vmul.f32 1.442695, %v1389_v44 }
 0x31e   : > { %1415 = vadd.xlane.f32.xlu2 %v2171_v45 }
 0x31f   : > { %2172 = vpow2.f32 %v1401_v58 }
 0x322   : > { %v1380_v38 = vpop.xlane.xlu2 %1379 }
 0x323   : > { %v1390_v53 = vsub.f32 %v1366_v2, %v1380_v38 }
 0x325   : > { %v2173_v5 = vpop.eup %2172  ;;  %v1403_v14 = vmul.f32 1.442695, %v1390_v53 }
 0x326   : > { %1417 = vadd.xlane.f32.xlu0 %v2173_v5 }
 0x327   : > { %2174 = vpow2.f32 %v1403_v14 }
 0x32a   : > { %v1382_v48 = vpop.xlane.xlu0 %1381 }
 0x32b   : > { %v1391_v49 = vsub.f32 %v1367_v57, %v1382_v48 }
 0x32d   : > { %v2175_v35 = vpop.eup %2174  ;;  %v1405_v24 = vmul.f32 1.442695, %v1391_v49 }
 0x32e   : > { %1419 = vadd.xlane.f32.xlu1 %v2175_v35 }
 0x32f   : > { %2176 = vpow2.f32 %v1405_v24 }
 0x332   : > { %v1384_v52 = vpop.xlane.xlu1 %1383 }
 0x333   : > { %v1392_v63 = vsub.f32 %v1368_v61, %v1384_v52 }
 0x335   : > { %v2177_v9 = vpop.eup %2176  ;;  %v1407_v12 = vmul.f32 1.442695, %v1392_v63 }
 0x336   : > { %1421 = vadd.xlane.f32.xlu2 %v2177_v9 }
 0x337   : > { %2178 = vpow2.f32 %v1407_v12 }
 0x33d   : > { %v2179_v8 = vpop.eup %2178 }
 0x33e   : > { %1423 = vadd.xlane.f32.xlu0 %v2179_v8 }
 0x379   : > { %v1410_v43 = vpop.xlane.xlu2 %1409 }
 0x37a   : > { %2180 = vrcp.f32 %v1410_v43 }
 0x380   : > { %v2181_v21 = vpop.eup %2180 }
 0x381   : > { %v1412_v18 = vpop.xlane.xlu0 %1411  ;;  %v1433_v23 = vmul.f32 %v2181_v21, %v2165_v47 }
 0x382   : > { %2182 = vrcp.f32 %v1412_v18 }
 0x388   : > { %v2183_v4 = vpop.eup %2182 }
 0x389   : > { %v1434_v27 = vmul.f32 %v2183_v4, %v2167_v55  ;;  %v1414_v36 = vpop.xlane.xlu1 %1413 }
 0x38a   : > { %2184 = vrcp.f32 %v1414_v36 }
 0x38b   : > { %v1441_v30 = vpack.c.bf16 %v1434_v27, %v1433_v23 }
 0x38d   : > { %1453 = vmatmul.bf16.vlgmr.msra.gmra.mxu2 %v1441_v30 }
 0x390   : > { %v2185_v20 = vpop.eup %2184 }
 0x391   : > { %v1416_v39 = vpop.xlane.xlu2 %1415  ;;  %v1435_v51 = vmul.f32 %v2185_v20, %v2169_v29 }
 0x392   : > { %2186 = vrcp.f32 %v1416_v39 }
 0x398   : > { %v2187_v10 = vpop.eup %2186 }
 0x399   : > { %v1436_v25 = vmul.f32 %v2187_v10, %v2171_v45  ;;  %v1418_v28 = vpop.xlane.xlu0 %1417 }
 0x39a   : > { %2188 = vrcp.f32 %v1418_v28 }
 0x39b   : > { %v1442_v19 = vpack.c.bf16 %v1436_v25, %v1435_v51 }
 0x39d   : > { %1458 = vmatmul.bf16.gmra.mxu2 %v1442_v19 }
 0x3a0   : > { %v2189_v0 = vpop.eup %2188 }
 0x3a1   : > { %v1420_v60 = vpop.xlane.xlu1 %1419  ;;  %v1437_v26 = vmul.f32 %v2189_v0, %v2173_v5 }
 0x3a2   : > { %2190 = vrcp.f32 %v1420_v60 }
 0x3a8   : > { %v2191_v3 = vpop.eup %2190 }
 0x3a9   : > { %v1438_v37 = vmul.f32 %v2191_v3, %v2175_v35  ;;  %v1422_v62 = vpop.xlane.xlu2 %1421 }
 0x3aa   : > { %2192 = vrcp.f32 %v1422_v62 }
 0x3ab   : > { %v1443_v22 = vpack.c.bf16 %v1438_v37, %v1437_v26 }
 0x3ad   : > { %1463 = vmatmul.bf16.gmra.mxu2 %v1443_v22 }
 0x3b0   : > { %v2193_v54 = vpop.eup %2192 }
 0x3b1   : > { %v1424_v50 = vpop.xlane.xlu0 %1423  ;;  %v1439_v6 = vmul.f32 %v2193_v54, %v2177_v9 }
 0x3b2   : > { %2194 = vrcp.f32 %v1424_v50 }
 0x3b8   : > { %v2195_v2 = vpop.eup %2194 }
 0x3b9   : > { %v1440_v11 = vmul.f32 %v2195_v2, %v2179_v8 }
 0x3bb   : > { %v1444_v46 = vpack.c.bf16 %v1440_v11, %v1439_v6 }
 0x3bd   : > { %1468 = vmatmul.bf16.gmra.mxu2 %v1444_v46 }
 0x410   : > { %v1454_v57 = vpop.f32.mrf.mxu2 }
 0x411   : > { %1474 = vst [vmem:[%s311_s11] sm:$0xff] %v1454_v57 }
 0x418   : > { %v1456_v32 = vpop.f32.mrf.mxu2 }
 0x419   : > { %1475 = vst [vmem:[%s311_s11 + $0x8] sm:$0xff] %v1456_v32 }
 0x420   : > { %v1459_v33 = vpop.f32.mrf.mxu2 }
 0x421   : > { %1476 = vst [vmem:[%s311_s11 + $0x10] sm:$0xff] %v1459_v33 }
 0x428   : > { %v1461_v61 = vpop.f32.mrf.mxu2 }
 0x429   : > { %1477 = vst [vmem:[%s311_s11 + $0x18] sm:$0xff] %v1461_v61 }
 0x430   : > { %v1464_v16 = vpop.f32.mrf.mxu2 }
 0x431   : > { %1478 = vst [vmem:[%s311_s11 + $0x20] sm:$0xff] %v1464_v16 }
 0x438   : > { %v1466_v17 = vpop.f32.mrf.mxu2 }
 0x439   : > { %1479 = vst [vmem:[%s311_s11 + $0x28] sm:$0xff] %v1466_v17 }
 0x440   : > { %v1469_v15 = vpop.f32.mrf.mxu2 }
 0x441   : > { %1480 = vst [vmem:[%s311_s11 + $0x30] sm:$0xff] %v1469_v15 }
 0x448   : > { %v1471_v42 = vpop.f32.mrf.mxu2 }
 0x449   : > { %1481 = vst [vmem:[%s311_s11 + $0x38] sm:$0xff] %v1471_v42 }
 0x44a   : > { %2343 = shalt.err (!%p2340_p9)
}
 0x44b   : > { %s2460_s13 = smov 128   ;;  %s2461_s2 = smov 8  }
 0x44c   : > { %2040 = dma.vmem_to_hbm [thread:$0]  (%p2590_p3), %s1498_s20, 1024, %s1500_s30, %s1483_s6, %s2460_s13, %s2460_s13, %s2461_s2  }
 0x44d PF: > { %s3145_s26 = sld [smem:[#allocation16_spill]]  ;;  %p2065_p10 = scmp.ge.s32.totalorder %s2450_s25, 2 }
 0x44f   : > { %p2057_p13 = pnand %p2065_p10, %p2602_p8 }
 0x451   : > { %p2058_p0 = pneg %p2057_p13 }
 0x453   : > { %s1514_s11 = sand.u32 1, %s3145_s26  }
 0x454   : > { %s1515_s5 = scalar_lea.sflag [#allocation4], %s1514_s11 }
 0x455   : > { %2405 = dma.done.wait (%p2058_p0), %s1515_s5, 1024  }
 0x456   : > { %2407 = vsyncadd (%p2058_p0), %s1515_s5, 4294966272  ;;  %s24_s25 = sadd.s32 1, %s2450_s25   ;;  %s3147_s10 = sld [smem:[#allocation17_spill]] }
 0x457   : > { %p21_p12 = scmp.ge.s32.totalorder %s24_s25, 6   ;;  %s3148_s20 = sld [smem:[#allocation22_spill]] }
 0x458   : > { %s3149_s21 = sld [smem:[#allocation18_spill]]  ;;  %s3152_s15 = smov %s2414_s16 }
 0x459   : > { %s3150_s23 = sld [smem:[#allocation19_spill]]  ;;  %s3153_s16 = smov %s2418_s17 }
 0x45a   : > { %s3151_s8 = sld [smem:[#allocation20_spill]]  ;;  %s3154_s17 = smov %s2627_s7 }
 0x45b   : > { %s3155_s18 = smov %s2426_s19  ;;  %s3157_s22 = smov %s2446_s24 }
 0x45c   : > { %s3156_s19 = smov %s3147_s10  ;;  %23 = sbr.rel (!%p21_p12) target bundleno = 16 (0x10), region = 102 }
 0x460   : > { %s3158_s24 = smov %s3151_s8 }
 0x461   :  { %1521 = vsyncpa [#allocation3], 1 }
 0x462   :  { %1523 = vsyncpa [#allocation3 + $0x1], 1 }
 0x463   :  { %1524 = vsyncpa [#allocation6], 1 }
 0x464   :  { %1526 = vsyncpa [#allocation6 + $0x1], 1 }
 0x465   :  { %1527 = vsyncpa [#allocation9], 1 }
 0x466   :  { %1528 = vsyncpa [#allocation4], 1 }
 0x467   :  { %1530 = vsyncpa [#allocation4 + $0x1], 1 }

</bundles_post_ra>
